<compile_context>
chip_gen: v5e
topology: v5e:2x2
jax: 0.10.0
libtpu: 0.0.40
codegen_flags: <defaults>
</compile_context>

<pallas_src>
import itertools

import numpy as np
import jax
import jax.numpy as jnp
from jax import lax
from jax.experimental import pallas as pl
from jax.experimental.pallas import tpu as pltpu


# ---------------------- static tap offsets & boundary masks ----------------------- #
def _tap_offsets(D, H, W):
    return [dz * H * W + dy * W + dx
            for dz, dy, dx in itertools.product((-1, 0, 1), repeat=3)]


def _tap_masks(D, H, W):
    """(27, D*H*W) f32 validity masks for the shift-and-mask im2col (padding=1)."""
    idx = np.arange(D * H * W)
    d = idx // (H * W)
    h = (idx // W) % H
    w = idx % W
    rows = []
    for dz, dy, dx in itertools.product((-1, 0, 1), repeat=3):
        ok = ((d + dz >= 0) & (d + dz < D) &
              (h + dy >= 0) & (h + dy < H) &
              (w + dx >= 0) & (w + dx < W))
        rows.append(ok.astype(np.float32))
    return jnp.asarray(np.stack(rows, axis=0))


# -------------------- Conv3d (+ fused partial BN stats) kernel -------------------- #
def _make_conv_kernel(D, H, W, Cin):
    offs = _tap_offsets(D, H, W)

    def kernel(x_ref, w_ref, mask_ref, y_ref, stats_ref, patch_ref):
        # x_ref     : (Cin, DHW)        lane-dense, one batch element
        # w_ref     : (Cout, 27*Cin)    taps stacked along K (tap-major, Cin-minor)
        # mask_ref  : (27, DHW)         precomputed boundary masks
        # y_ref     : (Cout, DHW)       lane-dense conv output
        # stats_ref : (Cout, 2)         per-element [sum, sumsq] over spatial
        # patch_ref : (27*Cin, DHW)     im2col patch scratch
        x = x_ref[...].astype(jnp.float32)
        m = mask_ref[...]

        # Shift-and-mask im2col: each tap is a static lane roll of the flat input,
        # with out-of-bounds (padding) positions zeroed by the mask.
        for t, off in enumerate(offs):
            shifted = x if off == 0 else jnp.roll(x, -off, axis=1)
            patch_ref[t * Cin:(t + 1) * Cin, :] = shifted * m[t:t + 1, :]

        # One MXU matmul with K = 27*Cin instead of 27 tiny K=Cin matmuls.
        acc = jnp.dot(w_ref[...].astype(jnp.float32), patch_ref[...],
                      preferred_element_type=jnp.float32)          # (Cout, DHW)
        y_ref[...] = acc.astype(y_ref.dtype)

        # Fused partial BN statistics (f32).
        stats_ref[:, 0:1] = jnp.sum(acc, axis=1, keepdims=True)
        stats_ref[:, 1:2] = jnp.sum(acc * acc, axis=1, keepdims=True)

    return kernel


def conv3d_with_stats(x_flat, w_mat, mask, spatial):
    """x_flat: (N, Cin, DHW); w_mat: (Cout, 27*Cin); mask: (27, DHW).
    Returns y (N, Cout, DHW) and stats (N, Cout, 2)."""
    N, Cin, DHW = x_flat.shape
    Cout, K = w_mat.shape
    D, H, W = spatial
    kernel = _make_conv_kernel(D, H, W, Cin)
    return pl.pallas_call(
        kernel,
        out_shape=(
            jax.ShapeDtypeStruct((N, Cout, DHW), jnp.float32),
            jax.ShapeDtypeStruct((N, Cout, 2), jnp.float32),
        ),
        grid=(N,),
        in_specs=[
            pl.BlockSpec((None, Cin, DHW), lambda n: (n, 0, 0)),
            pl.BlockSpec((Cout, K), lambda n: (0, 0)),
            pl.BlockSpec((27, DHW), lambda n: (0, 0)),
        ],
        out_specs=(
            pl.BlockSpec((None, Cout, DHW), lambda n: (n, 0, 0)),
            pl.BlockSpec((None, Cout, 2), lambda n: (n, 0, 0)),
        ),
        scratch_shapes=[pltpu.VMEM((K, DHW), jnp.float32)],
        compiler_params=pltpu.CompilerParams(dimension_semantics=("parallel",)),
    )(x_flat, w_mat, mask)


# ------------------ Per-channel affine (folded BN) + ReLU kernel ------------------ #
def _affine_relu_kernel(y_ref, scale_ref, shift_ref, o_ref):
    # y_ref: (Cout, TS); scale/shift: (Cout, 1); o_ref: (Cout, TS)
    out = y_ref[...].astype(jnp.float32) * scale_ref[...] + shift_ref[...]
    o_ref[...] = jnp.maximum(out, 0.0).astype(o_ref.dtype)


def _pick_spatial_tile(dhw):
    for ts in (2048, 1024, 512, 256, 128):
        if dhw % ts == 0:
            return ts
    return dhw  # full extent (legal: block dim equals array dim)


def affine_relu(y, scale, shift):
    """y: (N, Cout, DHW); scale/shift: (Cout, 1)."""
    N, Cout, DHW = y.shape
    ts = _pick_spatial_tile(DHW)
    return pl.pallas_call(
        _affine_relu_kernel,
        out_shape=jax.ShapeDtypeStruct((N, Cout, DHW), jnp.float32),
        grid=(N, DHW // ts),
        in_specs=[
            pl.BlockSpec((None, Cout, ts), lambda n, s: (n, 0, s)),
            pl.BlockSpec((Cout, 1), lambda n, s: (0, 0)),
            pl.BlockSpec((Cout, 1), lambda n, s: (0, 0)),
        ],
        out_specs=pl.BlockSpec((None, Cout, ts), lambda n, s: (n, 0, s)),
        compiler_params=pltpu.CompilerParams(
            dimension_semantics=("parallel", "parallel")),
    )(y, scale, shift)


# ------------------------------------ Module -------------------------------------- #
def conv_norm_active(x_ncdhw, weight_oidhw, bias, gamma, beta, eps=1e-5):
    """Full ConvNormActive forward. x: (N, Cin, D, H, W) like PyTorch (NCDHW)."""
    del bias  # per-channel conv bias is exactly cancelled by train-mode BatchNorm
    N, Cin, D, H, W = x_ncdhw.shape
    Cout = weight_oidhw.shape[0]
    KD, KH, KW = weight_oidhw.shape[2:]
    assert (KD, KH, KW) == (3, 3, 3), "specialized to kernel_size=3, stride=1, padding=1"
    DHW = D * H * W

    # PyTorch Conv3d weight (Cout, Cin, kd, kh, kw) -> (Cout, kd*kh*kw*Cin) to match the
    # tap-major / Cin-minor im2col ordering used in the kernel.
    w_mat = jnp.transpose(weight_oidhw, (0, 2, 3, 4, 1)).reshape(Cout, KD * KH * KW * Cin)

    x_flat = x_ncdhw.reshape(N, Cin, DHW)               # contiguous reshape: free
    mask = _tap_masks(D, H, W)                          # (27, DHW) static constant

    y, stats = conv3d_with_stats(x_flat, w_mat, mask, (D, H, W))

    # Fold BN (train-mode batch stats) into a per-channel affine (tiny XLA-side math).
    tot = jnp.sum(stats, axis=0)                        # (Cout, 2)
    cnt = jnp.float32(N * DHW)
    mean = tot[:, 0] / cnt
    var = jnp.maximum(tot[:, 1] / cnt - mean * mean, 0.0)
    scale = gamma.astype(jnp.float32) * lax.rsqrt(var + eps)
    shift = beta.astype(jnp.float32) - mean * scale

    out = affine_relu(y, scale.reshape(Cout, 1), shift.reshape(Cout, 1))
    return out.reshape(N, Cout, D, H, W)                # already NCDHW: no transposes


# ------------------------------ Pure-JAX reference --------------------------------- #
def _reference(x_ncdhw, weight_oidhw, bias, gamma, beta):
    y = lax.conv_general_dilated(
        x_ncdhw, weight_oidhw,
        window_strides=(1, 1, 1), padding=((1, 1), (1, 1), (1, 1)),
        dimension_numbers=("NCDHW", "OIDHW", "NCDHW"))
    y = y + bias.reshape(1, -1, 1, 1, 1)
    mean = jnp.mean(y, axis=(0, 2, 3, 4), keepdims=True)
    var = jnp.mean((y - mean) ** 2, axis=(0, 2, 3, 4), keepdims=True)
    yhat = (y - mean) * lax.rsqrt(var + 1e-5)
    out = yhat * gamma.reshape(1, -1, 1, 1, 1) + beta.reshape(1, -1, 1, 1, 1)
    return jnp.maximum(out, 0.0)


if __name__ == "__main__":
    key = jax.random.PRNGKey(0)
    k_x, k_w, k_b = jax.random.split(key, 3)

    N, Cin, Cout, D, H, W = 2, 4, 8, 8, 8, 8
    x = jax.random.normal(k_x, (N, Cin, D, H, W), dtype=jnp.float32)
    weight = jax.random.normal(k_w, (Cout, Cin, 3, 3, 3), dtype=jnp.float32) * 0.1
    bias = jax.random.normal(k_b, (Cout,), dtype=jnp.float32) * 0.1
    gamma = jnp.ones((Cout,), dtype=jnp.float32)   # BatchNorm default weight
    beta = jnp.zeros((Cout,), dtype=jnp.float32)   # BatchNorm default bias

    out = conv_norm_active(x, weight, bias, gamma, beta)
    out = jax.block_until_ready(out)

    ref = _reference(x, weight, bias, gamma, beta)
    assert out.shape == (N, Cout, D, H, W), out.shape
    assert jnp.allclose(out, ref, rtol=1e-4, atol=1e-4), \
        float(jnp.max(jnp.abs(out - ref)))

    print("KERNEL_OK")
</pallas_src>

<mosaic_0001>
module attributes {stable_mosaic.version = 11 : i64} {
  func.func @kernel(%arg0: i32, %arg1: memref<1x4x512xf32, #tpu.memory_space<vmem>>, %arg2: memref<8x108xf32, #tpu.memory_space<vmem>>, %arg3: memref<27x512xf32, #tpu.memory_space<vmem>>, %arg4: memref<1x8x512xf32, #tpu.memory_space<vmem>>, %arg5: memref<1x8x2xf32, #tpu.memory_space<vmem>>, %arg6: memref<108x512xf32, #tpu.memory_space<vmem>>) attributes {dimension_semantics = [#tpu.dimension_semantics<parallel>], iteration_bounds = array<i64: 2>, scalar_prefetch = 0 : i64, scratch_operands = 1 : i64, tpu.core_type = #tpu.core_type<tc>, window_params = [{transform_indices = @transform_0, window_bounds = array<i64: 1, 4, 512>}, {pipeline_mode = #tpu.pipeline_mode<synchronous>, transform_indices = @transform_1, window_bounds = array<i64: 8, 108>}, {pipeline_mode = #tpu.pipeline_mode<synchronous>, transform_indices = @transform_2, window_bounds = array<i64: 27, 512>}, {transform_indices = @transform_3, window_bounds = array<i64: 1, 8, 512>}, {transform_indices = @transform_4, window_bounds = array<i64: 1, 8, 2>}]} {
    %c0 = arith.constant 0 : index
    %c0_0 = arith.constant 0 : index
    %c0_1 = arith.constant 0 : index
    %0 = vector.load %arg1[%c0, %c0_0, %c0_1] : memref<1x4x512xf32, #tpu.memory_space<vmem>>, vector<1x4x512xf32>
    %1 = vector.shape_cast %0 : vector<1x4x512xf32> to vector<4x512xf32>
    %c0_2 = arith.constant 0 : index
    %c0_3 = arith.constant 0 : index
    %2 = vector.load %arg3[%c0_2, %c0_3] : memref<27x512xf32, #tpu.memory_space<vmem>>, vector<27x512xf32>
    %3 = vector.extract_strided_slice %1 {offsets = [0, 439], sizes = [4, 73], strides = [1, 1]} : vector<4x512xf32> to vector<4x73xf32>
    %4 = vector.extract_strided_slice %1 {offsets = [0, 0], sizes = [4, 439], strides = [1, 1]} : vector<4x512xf32> to vector<4x439xf32>
    %5 = tpu.concatenate %3, %4 in 1 : vector<4x73xf32>, vector<4x439xf32> -> vector<4x512xf32>
    %6 = vector.extract_strided_slice %2 {offsets = [0, 0], sizes = [1, 512], strides = [1, 1]} : vector<27x512xf32> to vector<1x512xf32>
    %7 = vector.broadcast %6 : vector<1x512xf32> to vector<4x512xf32>
    %8 = arith.mulf %5, %7 : vector<4x512xf32>
    %c0_4 = arith.constant 0 : index
    %c0_5 = arith.constant 0 : index
    %9 = vector.load %arg6[%c0_4, %c0_5] : memref<108x512xf32, #tpu.memory_space<vmem>>, vector<4x512xf32>
    tpu.vector_store %arg6[%c0_4, %c0_5], %8 {strides = array<i32>} : memref<108x512xf32, #tpu.memory_space<vmem>>, vector<4x512xf32>,
    %10 = vector.extract_strided_slice %1 {offsets = [0, 440], sizes = [4, 72], strides = [1, 1]} : vector<4x512xf32> to vector<4x72xf32>
    %11 = vector.extract_strided_slice %1 {offsets = [0, 0], sizes = [4, 440], strides = [1, 1]} : vector<4x512xf32> to vector<4x440xf32>
    %12 = tpu.concatenate %10, %11 in 1 : vector<4x72xf32>, vector<4x440xf32> -> vector<4x512xf32>
    %13 = vector.extract_strided_slice %2 {offsets = [1, 0], sizes = [1, 512], strides = [1, 1]} : vector<27x512xf32> to vector<1x512xf32>
    %14 = vector.broadcast %13 : vector<1x512xf32> to vector<4x512xf32>
    %15 = arith.mulf %12, %14 : vector<4x512xf32>
    %c4 = arith.constant 4 : index
    %c0_6 = arith.constant 0 : index
    %16 = vector.load %arg6[%c4, %c0_6] : memref<108x512xf32, #tpu.memory_space<vmem>>, vector<4x512xf32>
    tpu.vector_store %arg6[%c4, %c0_6], %15 {strides = array<i32>} : memref<108x512xf32, #tpu.memory_space<vmem>>, vector<4x512xf32>,
    %17 = vector.extract_strided_slice %1 {offsets = [0, 441], sizes = [4, 71], strides = [1, 1]} : vector<4x512xf32> to vector<4x71xf32>
    %18 = vector.extract_strided_slice %1 {offsets = [0, 0], sizes = [4, 441], strides = [1, 1]} : vector<4x512xf32> to vector<4x441xf32>
    %19 = tpu.concatenate %17, %18 in 1 : vector<4x71xf32>, vector<4x441xf32> -> vector<4x512xf32>
    %20 = vector.extract_strided_slice %2 {offsets = [2, 0], sizes = [1, 512], strides = [1, 1]} : vector<27x512xf32> to vector<1x512xf32>
    %21 = vector.broadcast %20 : vector<1x512xf32> to vector<4x512xf32>
    %22 = arith.mulf %19, %21 : vector<4x512xf32>
    %c8 = arith.constant 8 : index
    %c0_7 = arith.constant 0 : index
    %23 = vector.load %arg6[%c8, %c0_7] : memref<108x512xf32, #tpu.memory_space<vmem>>, vector<4x512xf32>
    tpu.vector_store %arg6[%c8, %c0_7], %22 {strides = array<i32>} : memref<108x512xf32, #tpu.memory_space<vmem>>, vector<4x512xf32>,
    %24 = vector.extract_strided_slice %1 {offsets = [0, 447], sizes = [4, 65], strides = [1, 1]} : vector<4x512xf32> to vector<4x65xf32>
    %25 = vector.extract_strided_slice %1 {offsets = [0, 0], sizes = [4, 447], strides = [1, 1]} : vector<4x512xf32> to vector<4x447xf32>
    %26 = tpu.concatenate %24, %25 in 1 : vector<4x65xf32>, vector<4x447xf32> -> vector<4x512xf32>
    %27 = vector.extract_strided_slice %2 {offsets = [3, 0], sizes = [1, 512], strides = [1, 1]} : vector<27x512xf32> to vector<1x512xf32>
    %28 = vector.broadcast %27 : vector<1x512xf32> to vector<4x512xf32>
    %29 = arith.mulf %26, %28 : vector<4x512xf32>
    %c12 = arith.constant 12 : index
    %c0_8 = arith.constant 0 : index
    %30 = vector.load %arg6[%c12, %c0_8] : memref<108x512xf32, #tpu.memory_space<vmem>>, vector<4x512xf32>
    tpu.vector_store %arg6[%c12, %c0_8], %29 {strides = array<i32>} : memref<108x512xf32, #tpu.memory_space<vmem>>, vector<4x512xf32>,
    %31 = vector.extract_strided_slice %1 {offsets = [0, 448], sizes = [4, 64], strides = [1, 1]} : vector<4x512xf32> to vector<4x64xf32>
    %32 = vector.extract_strided_slice %1 {offsets = [0, 0], sizes = [4, 448], strides = [1, 1]} : vector<4x512xf32> to vector<4x448xf32>
    %33 = tpu.concatenate %31, %32 in 1 : vector<4x64xf32>, vector<4x448xf32> -> vector<4x512xf32>
    %34 = vector.extract_strided_slice %2 {offsets = [4, 0], sizes = [1, 512], strides = [1, 1]} : vector<27x512xf32> to vector<1x512xf32>
    %35 = vector.broadcast %34 : vector<1x512xf32> to vector<4x512xf32>
    %36 = arith.mulf %33, %35 : vector<4x512xf32>
    %c16 = arith.constant 16 : index
    %c0_9 = arith.constant 0 : index
    %37 = vector.load %arg6[%c16, %c0_9] : memref<108x512xf32, #tpu.memory_space<vmem>>, vector<4x512xf32>
    tpu.vector_store %arg6[%c16, %c0_9], %36 {strides = array<i32>} : memref<108x512xf32, #tpu.memory_space<vmem>>, vector<4x512xf32>,
    %38 = vector.extract_strided_slice %1 {offsets = [0, 449], sizes = [4, 63], strides = [1, 1]} : vector<4x512xf32> to vector<4x63xf32>
    %39 = vector.extract_strided_slice %1 {offsets = [0, 0], sizes = [4, 449], strides = [1, 1]} : vector<4x512xf32> to vector<4x449xf32>
    %40 = tpu.concatenate %38, %39 in 1 : vector<4x63xf32>, vector<4x449xf32> -> vector<4x512xf32>
    %41 = vector.extract_strided_slice %2 {offsets = [5, 0], sizes = [1, 512], strides = [1, 1]} : vector<27x512xf32> to vector<1x512xf32>
    %42 = vector.broadcast %41 : vector<1x512xf32> to vector<4x512xf32>
    %43 = arith.mulf %40, %42 : vector<4x512xf32>
    %c20 = arith.constant 20 : index
    %c0_10 = arith.constant 0 : index
    %44 = vector.load %arg6[%c20, %c0_10] : memref<108x512xf32, #tpu.memory_space<vmem>>, vector<4x512xf32>
    tpu.vector_store %arg6[%c20, %c0_10], %43 {strides = array<i32>} : memref<108x512xf32, #tpu.memory_space<vmem>>, vector<4x512xf32>,
    %45 = vector.extract_strided_slice %1 {offsets = [0, 455], sizes = [4, 57], strides = [1, 1]} : vector<4x512xf32> to vector<4x57xf32>
    %46 = vector.extract_strided_slice %1 {offsets = [0, 0], sizes = [4, 455], strides = [1, 1]} : vector<4x512xf32> to vector<4x455xf32>
    %47 = tpu.concatenate %45, %46 in 1 : vector<4x57xf32>, vector<4x455xf32> -> vector<4x512xf32>
    %48 = vector.extract_strided_slice %2 {offsets = [6, 0], sizes = [1, 512], strides = [1, 1]} : vector<27x512xf32> to vector<1x512xf32>
    %49 = vector.broadcast %48 : vector<1x512xf32> to vector<4x512xf32>
    %50 = arith.mulf %47, %49 : vector<4x512xf32>
    %c24 = arith.constant 24 : index
    %c0_11 = arith.constant 0 : index
    %51 = vector.load %arg6[%c24, %c0_11] : memref<108x512xf32, #tpu.memory_space<vmem>>, vector<4x512xf32>
    tpu.vector_store %arg6[%c24, %c0_11], %50 {strides = array<i32>} : memref<108x512xf32, #tpu.memory_space<vmem>>, vector<4x512xf32>,
    %52 = vector.extract_strided_slice %1 {offsets = [0, 456], sizes = [4, 56], strides = [1, 1]} : vector<4x512xf32> to vector<4x56xf32>
    %53 = vector.extract_strided_slice %1 {offsets = [0, 0], sizes = [4, 456], strides = [1, 1]} : vector<4x512xf32> to vector<4x456xf32>
    %54 = tpu.concatenate %52, %53 in 1 : vector<4x56xf32>, vector<4x456xf32> -> vector<4x512xf32>
    %55 = vector.extract_strided_slice %2 {offsets = [7, 0], sizes = [1, 512], strides = [1, 1]} : vector<27x512xf32> to vector<1x512xf32>
    %56 = vector.broadcast %55 : vector<1x512xf32> to vector<4x512xf32>
    %57 = arith.mulf %54, %56 : vector<4x512xf32>
    %c28 = arith.constant 28 : index
    %c0_12 = arith.constant 0 : index
    %58 = vector.load %arg6[%c28, %c0_12] : memref<108x512xf32, #tpu.memory_space<vmem>>, vector<4x512xf32>
    tpu.vector_store %arg6[%c28, %c0_12], %57 {strides = array<i32>} : memref<108x512xf32, #tpu.memory_space<vmem>>, vector<4x512xf32>,
    %59 = vector.extract_strided_slice %1 {offsets = [0, 457], sizes = [4, 55], strides = [1, 1]} : vector<4x512xf32> to vector<4x55xf32>
    %60 = vector.extract_strided_slice %1 {offsets = [0, 0], sizes = [4, 457], strides = [1, 1]} : vector<4x512xf32> to vector<4x457xf32>
    %61 = tpu.concatenate %59, %60 in 1 : vector<4x55xf32>, vector<4x457xf32> -> vector<4x512xf32>
    %62 = vector.extract_strided_slice %2 {offsets = [8, 0], sizes = [1, 512], strides = [1, 1]} : vector<27x512xf32> to vector<1x512xf32>
    %63 = vector.broadcast %62 : vector<1x512xf32> to vector<4x512xf32>
    %64 = arith.mulf %61, %63 : vector<4x512xf32>
    %c32 = arith.constant 32 : index
    %c0_13 = arith.constant 0 : index
    %65 = vector.load %arg6[%c32, %c0_13] : memref<108x512xf32, #tpu.memory_space<vmem>>, vector<4x512xf32>
    tpu.vector_store %arg6[%c32, %c0_13], %64 {strides = array<i32>} : memref<108x512xf32, #tpu.memory_space<vmem>>, vector<4x512xf32>,
    %66 = vector.extract_strided_slice %1 {offsets = [0, 503], sizes = [4, 9], strides = [1, 1]} : vector<4x512xf32> to vector<4x9xf32>
    %67 = vector.extract_strided_slice %1 {offsets = [0, 0], sizes = [4, 503], strides = [1, 1]} : vector<4x512xf32> to vector<4x503xf32>
    %68 = tpu.concatenate %66, %67 in 1 : vector<4x9xf32>, vector<4x503xf32> -> vector<4x512xf32>
    %69 = vector.extract_strided_slice %2 {offsets = [9, 0], sizes = [1, 512], strides = [1, 1]} : vector<27x512xf32> to vector<1x512xf32>
    %70 = vector.broadcast %69 : vector<1x512xf32> to vector<4x512xf32>
    %71 = arith.mulf %68, %70 : vector<4x512xf32>
    %c36 = arith.constant 36 : index
    %c0_14 = arith.constant 0 : index
    %72 = vector.load %arg6[%c36, %c0_14] : memref<108x512xf32, #tpu.memory_space<vmem>>, vector<4x512xf32>
    tpu.vector_store %arg6[%c36, %c0_14], %71 {strides = array<i32>} : memref<108x512xf32, #tpu.memory_space<vmem>>, vector<4x512xf32>,
    %73 = vector.extract_strided_slice %1 {offsets = [0, 504], sizes = [4, 8], strides = [1, 1]} : vector<4x512xf32> to vector<4x8xf32>
    %74 = vector.extract_strided_slice %1 {offsets = [0, 0], sizes = [4, 504], strides = [1, 1]} : vector<4x512xf32> to vector<4x504xf32>
    %75 = tpu.concatenate %73, %74 in 1 : vector<4x8xf32>, vector<4x504xf32> -> vector<4x512xf32>
    %76 = vector.extract_strided_slice %2 {offsets = [10, 0], sizes = [1, 512], strides = [1, 1]} : vector<27x512xf32> to vector<1x512xf32>
    %77 = vector.broadcast %76 : vector<1x512xf32> to vector<4x512xf32>
    %78 = arith.mulf %75, %77 : vector<4x512xf32>
    %c40 = arith.constant 40 : index
    %c0_15 = arith.constant 0 : index
    %79 = vector.load %arg6[%c40, %c0_15] : memref<108x512xf32, #tpu.memory_space<vmem>>, vector<4x512xf32>
    tpu.vector_store %arg6[%c40, %c0_15], %78 {strides = array<i32>} : memref<108x512xf32, #tpu.memory_space<vmem>>, vector<4x512xf32>,
    %80 = vector.extract_strided_slice %1 {offsets = [0, 505], sizes = [4, 7], strides = [1, 1]} : vector<4x512xf32> to vector<4x7xf32>
    %81 = vector.extract_strided_slice %1 {offsets = [0, 0], sizes = [4, 505], strides = [1, 1]} : vector<4x512xf32> to vector<4x505xf32>
    %82 = tpu.concatenate %80, %81 in 1 : vector<4x7xf32>, vector<4x505xf32> -> vector<4x512xf32>
    %83 = vector.extract_strided_slice %2 {offsets = [11, 0], sizes = [1, 512], strides = [1, 1]} : vector<27x512xf32> to vector<1x512xf32>
    %84 = vector.broadcast %83 : vector<1x512xf32> to vector<4x512xf32>
    %85 = arith.mulf %82, %84 : vector<4x512xf32>
    %c44 = arith.constant 44 : index
    %c0_16 = arith.constant 0 : index
    %86 = vector.load %arg6[%c44, %c0_16] : memref<108x512xf32, #tpu.memory_space<vmem>>, vector<4x512xf32>
    tpu.vector_store %arg6[%c44, %c0_16], %85 {strides = array<i32>} : memref<108x512xf32, #tpu.memory_space<vmem>>, vector<4x512xf32>,
    %87 = vector.extract_strided_slice %1 {offsets = [0, 511], sizes = [4, 1], strides = [1, 1]} : vector<4x512xf32> to vector<4x1xf32>
    %88 = vector.extract_strided_slice %1 {offsets = [0, 0], sizes = [4, 511], strides = [1, 1]} : vector<4x512xf32> to vector<4x511xf32>
    %89 = tpu.concatenate %87, %88 in 1 : vector<4x1xf32>, vector<4x511xf32> -> vector<4x512xf32>
    %90 = vector.extract_strided_slice %2 {offsets = [12, 0], sizes = [1, 512], strides = [1, 1]} : vector<27x512xf32> to vector<1x512xf32>
    %91 = vector.broadcast %90 : vector<1x512xf32> to vector<4x512xf32>
    %92 = arith.mulf %89, %91 : vector<4x512xf32>
    %c48 = arith.constant 48 : index
    %c0_17 = arith.constant 0 : index
    %93 = vector.load %arg6[%c48, %c0_17] : memref<108x512xf32, #tpu.memory_space<vmem>>, vector<4x512xf32>
    tpu.vector_store %arg6[%c48, %c0_17], %92 {strides = array<i32>} : memref<108x512xf32, #tpu.memory_space<vmem>>, vector<4x512xf32>,
    %94 = vector.extract_strided_slice %2 {offsets = [13, 0], sizes = [1, 512], strides = [1, 1]} : vector<27x512xf32> to vector<1x512xf32>
    %95 = vector.broadcast %94 : vector<1x512xf32> to vector<4x512xf32>
    %96 = arith.mulf %1, %95 : vector<4x512xf32>
    %c52 = arith.constant 52 : index
    %c0_18 = arith.constant 0 : index
    %97 = vector.load %arg6[%c52, %c0_18] : memref<108x512xf32, #tpu.memory_space<vmem>>, vector<4x512xf32>
    tpu.vector_store %arg6[%c52, %c0_18], %96 {strides = array<i32>} : memref<108x512xf32, #tpu.memory_space<vmem>>, vector<4x512xf32>,
    %98 = vector.extract_strided_slice %1 {offsets = [0, 1], sizes = [4, 511], strides = [1, 1]} : vector<4x512xf32> to vector<4x511xf32>
    %99 = vector.extract_strided_slice %1 {offsets = [0, 0], sizes = [4, 1], strides = [1, 1]} : vector<4x512xf32> to vector<4x1xf32>
    %100 = tpu.concatenate %98, %99 in 1 : vector<4x511xf32>, vector<4x1xf32> -> vector<4x512xf32>
    %101 = vector.extract_strided_slice %2 {offsets = [14, 0], sizes = [1, 512], strides = [1, 1]} : vector<27x512xf32> to vector<1x512xf32>
    %102 = vector.broadcast %101 : vector<1x512xf32> to vector<4x512xf32>
    %103 = arith.mulf %100, %102 : vector<4x512xf32>
    %c56 = arith.constant 56 : index
    %c0_19 = arith.constant 0 : index
    %104 = vector.load %arg6[%c56, %c0_19] : memref<108x512xf32, #tpu.memory_space<vmem>>, vector<4x512xf32>
    tpu.vector_store %arg6[%c56, %c0_19], %103 {strides = array<i32>} : memref<108x512xf32, #tpu.memory_space<vmem>>, vector<4x512xf32>,
    %105 = vector.extract_strided_slice %1 {offsets = [0, 7], sizes = [4, 505], strides = [1, 1]} : vector<4x512xf32> to vector<4x505xf32>
    %106 = vector.extract_strided_slice %1 {offsets = [0, 0], sizes = [4, 7], strides = [1, 1]} : vector<4x512xf32> to vector<4x7xf32>
    %107 = tpu.concatenate %105, %106 in 1 : vector<4x505xf32>, vector<4x7xf32> -> vector<4x512xf32>
    %108 = vector.extract_strided_slice %2 {offsets = [15, 0], sizes = [1, 512], strides = [1, 1]} : vector<27x512xf32> to vector<1x512xf32>
    %109 = vector.broadcast %108 : vector<1x512xf32> to vector<4x512xf32>
    %110 = arith.mulf %107, %109 : vector<4x512xf32>
    %c60 = arith.constant 60 : index
    %c0_20 = arith.constant 0 : index
    %111 = vector.load %arg6[%c60, %c0_20] : memref<108x512xf32, #tpu.memory_space<vmem>>, vector<4x512xf32>
    tpu.vector_store %arg6[%c60, %c0_20], %110 {strides = array<i32>} : memref<108x512xf32, #tpu.memory_space<vmem>>, vector<4x512xf32>,
    %112 = vector.extract_strided_slice %1 {offsets = [0, 8], sizes = [4, 504], strides = [1, 1]} : vector<4x512xf32> to vector<4x504xf32>
    %113 = vector.extract_strided_slice %1 {offsets = [0, 0], sizes = [4, 8], strides = [1, 1]} : vector<4x512xf32> to vector<4x8xf32>
    %114 = tpu.concatenate %112, %113 in 1 : vector<4x504xf32>, vector<4x8xf32> -> vector<4x512xf32>
    %115 = vector.extract_strided_slice %2 {offsets = [16, 0], sizes = [1, 512], strides = [1, 1]} : vector<27x512xf32> to vector<1x512xf32>
    %116 = vector.broadcast %115 : vector<1x512xf32> to vector<4x512xf32>
    %117 = arith.mulf %114, %116 : vector<4x512xf32>
    %c64 = arith.constant 64 : index
    %c0_21 = arith.constant 0 : index
    %118 = vector.load %arg6[%c64, %c0_21] : memref<108x512xf32, #tpu.memory_space<vmem>>, vector<4x512xf32>
    tpu.vector_store %arg6[%c64, %c0_21], %117 {strides = array<i32>} : memref<108x512xf32, #tpu.memory_space<vmem>>, vector<4x512xf32>,
    %119 = vector.extract_strided_slice %1 {offsets = [0, 9], sizes = [4, 503], strides = [1, 1]} : vector<4x512xf32> to vector<4x503xf32>
    %120 = vector.extract_strided_slice %1 {offsets = [0, 0], sizes = [4, 9], strides = [1, 1]} : vector<4x512xf32> to vector<4x9xf32>
    %121 = tpu.concatenate %119, %120 in 1 : vector<4x503xf32>, vector<4x9xf32> -> vector<4x512xf32>
    %122 = vector.extract_strided_slice %2 {offsets = [17, 0], sizes = [1, 512], strides = [1, 1]} : vector<27x512xf32> to vector<1x512xf32>
    %123 = vector.broadcast %122 : vector<1x512xf32> to vector<4x512xf32>
    %124 = arith.mulf %121, %123 : vector<4x512xf32>
    %c68 = arith.constant 68 : index
    %c0_22 = arith.constant 0 : index
    %125 = vector.load %arg6[%c68, %c0_22] : memref<108x512xf32, #tpu.memory_space<vmem>>, vector<4x512xf32>
    tpu.vector_store %arg6[%c68, %c0_22], %124 {strides = array<i32>} : memref<108x512xf32, #tpu.memory_space<vmem>>, vector<4x512xf32>,
    %126 = vector.extract_strided_slice %1 {offsets = [0, 55], sizes = [4, 457], strides = [1, 1]} : vector<4x512xf32> to vector<4x457xf32>
    %127 = vector.extract_strided_slice %1 {offsets = [0, 0], sizes = [4, 55], strides = [1, 1]} : vector<4x512xf32> to vector<4x55xf32>
    %128 = tpu.concatenate %126, %127 in 1 : vector<4x457xf32>, vector<4x55xf32> -> vector<4x512xf32>
    %129 = vector.extract_strided_slice %2 {offsets = [18, 0], sizes = [1, 512], strides = [1, 1]} : vector<27x512xf32> to vector<1x512xf32>
    %130 = vector.broadcast %129 : vector<1x512xf32> to vector<4x512xf32>
    %131 = arith.mulf %128, %130 : vector<4x512xf32>
    %c72 = arith.constant 72 : index
    %c0_23 = arith.constant 0 : index
    %132 = vector.load %arg6[%c72, %c0_23] : memref<108x512xf32, #tpu.memory_space<vmem>>, vector<4x512xf32>
    tpu.vector_store %arg6[%c72, %c0_23], %131 {strides = array<i32>} : memref<108x512xf32, #tpu.memory_space<vmem>>, vector<4x512xf32>,
    %133 = vector.extract_strided_slice %1 {offsets = [0, 56], sizes = [4, 456], strides = [1, 1]} : vector<4x512xf32> to vector<4x456xf32>
    %134 = vector.extract_strided_slice %1 {offsets = [0, 0], sizes = [4, 56], strides = [1, 1]} : vector<4x512xf32> to vector<4x56xf32>
    %135 = tpu.concatenate %133, %134 in 1 : vector<4x456xf32>, vector<4x56xf32> -> vector<4x512xf32>
    %136 = vector.extract_strided_slice %2 {offsets = [19, 0], sizes = [1, 512], strides = [1, 1]} : vector<27x512xf32> to vector<1x512xf32>
    %137 = vector.broadcast %136 : vector<1x512xf32> to vector<4x512xf32>
    %138 = arith.mulf %135, %137 : vector<4x512xf32>
    %c76 = arith.constant 76 : index
    %c0_24 = arith.constant 0 : index
    %139 = vector.load %arg6[%c76, %c0_24] : memref<108x512xf32, #tpu.memory_space<vmem>>, vector<4x512xf32>
    tpu.vector_store %arg6[%c76, %c0_24], %138 {strides = array<i32>} : memref<108x512xf32, #tpu.memory_space<vmem>>, vector<4x512xf32>,
    %140 = vector.extract_strided_slice %1 {offsets = [0, 57], sizes = [4, 455], strides = [1, 1]} : vector<4x512xf32> to vector<4x455xf32>
    %141 = vector.extract_strided_slice %1 {offsets = [0, 0], sizes = [4, 57], strides = [1, 1]} : vector<4x512xf32> to vector<4x57xf32>
    %142 = tpu.concatenate %140, %141 in 1 : vector<4x455xf32>, vector<4x57xf32> -> vector<4x512xf32>
    %143 = vector.extract_strided_slice %2 {offsets = [20, 0], sizes = [1, 512], strides = [1, 1]} : vector<27x512xf32> to vector<1x512xf32>
    %144 = vector.broadcast %143 : vector<1x512xf32> to vector<4x512xf32>
    %145 = arith.mulf %142, %144 : vector<4x512xf32>
    %c80 = arith.constant 80 : index
    %c0_25 = arith.constant 0 : index
    %146 = vector.load %arg6[%c80, %c0_25] : memref<108x512xf32, #tpu.memory_space<vmem>>, vector<4x512xf32>
    tpu.vector_store %arg6[%c80, %c0_25], %145 {strides = array<i32>} : memref<108x512xf32, #tpu.memory_space<vmem>>, vector<4x512xf32>,
    %147 = vector.extract_strided_slice %1 {offsets = [0, 63], sizes = [4, 449], strides = [1, 1]} : vector<4x512xf32> to vector<4x449xf32>
    %148 = vector.extract_strided_slice %1 {offsets = [0, 0], sizes = [4, 63], strides = [1, 1]} : vector<4x512xf32> to vector<4x63xf32>
    %149 = tpu.concatenate %147, %148 in 1 : vector<4x449xf32>, vector<4x63xf32> -> vector<4x512xf32>
    %150 = vector.extract_strided_slice %2 {offsets = [21, 0], sizes = [1, 512], strides = [1, 1]} : vector<27x512xf32> to vector<1x512xf32>
    %151 = vector.broadcast %150 : vector<1x512xf32> to vector<4x512xf32>
    %152 = arith.mulf %149, %151 : vector<4x512xf32>
    %c84 = arith.constant 84 : index
    %c0_26 = arith.constant 0 : index
    %153 = vector.load %arg6[%c84, %c0_26] : memref<108x512xf32, #tpu.memory_space<vmem>>, vector<4x512xf32>
    tpu.vector_store %arg6[%c84, %c0_26], %152 {strides = array<i32>} : memref<108x512xf32, #tpu.memory_space<vmem>>, vector<4x512xf32>,
    %154 = vector.extract_strided_slice %1 {offsets = [0, 64], sizes = [4, 448], strides = [1, 1]} : vector<4x512xf32> to vector<4x448xf32>
    %155 = vector.extract_strided_slice %1 {offsets = [0, 0], sizes = [4, 64], strides = [1, 1]} : vector<4x512xf32> to vector<4x64xf32>
    %156 = tpu.concatenate %154, %155 in 1 : vector<4x448xf32>, vector<4x64xf32> -> vector<4x512xf32>
    %157 = vector.extract_strided_slice %2 {offsets = [22, 0], sizes = [1, 512], strides = [1, 1]} : vector<27x512xf32> to vector<1x512xf32>
    %158 = vector.broadcast %157 : vector<1x512xf32> to vector<4x512xf32>
    %159 = arith.mulf %156, %158 : vector<4x512xf32>
    %c88 = arith.constant 88 : index
    %c0_27 = arith.constant 0 : index
    %160 = vector.load %arg6[%c88, %c0_27] : memref<108x512xf32, #tpu.memory_space<vmem>>, vector<4x512xf32>
    tpu.vector_store %arg6[%c88, %c0_27], %159 {strides = array<i32>} : memref<108x512xf32, #tpu.memory_space<vmem>>, vector<4x512xf32>,
    %161 = vector.extract_strided_slice %1 {offsets = [0, 65], sizes = [4, 447], strides = [1, 1]} : vector<4x512xf32> to vector<4x447xf32>
    %162 = vector.extract_strided_slice %1 {offsets = [0, 0], sizes = [4, 65], strides = [1, 1]} : vector<4x512xf32> to vector<4x65xf32>
    %163 = tpu.concatenate %161, %162 in 1 : vector<4x447xf32>, vector<4x65xf32> -> vector<4x512xf32>
    %164 = vector.extract_strided_slice %2 {offsets = [23, 0], sizes = [1, 512], strides = [1, 1]} : vector<27x512xf32> to vector<1x512xf32>
    %165 = vector.broadcast %164 : vector<1x512xf32> to vector<4x512xf32>
    %166 = arith.mulf %163, %165 : vector<4x512xf32>
    %c92 = arith.constant 92 : index
    %c0_28 = arith.constant 0 : index
    %167 = vector.load %arg6[%c92, %c0_28] : memref<108x512xf32, #tpu.memory_space<vmem>>, vector<4x512xf32>
    tpu.vector_store %arg6[%c92, %c0_28], %166 {strides = array<i32>} : memref<108x512xf32, #tpu.memory_space<vmem>>, vector<4x512xf32>,
    %168 = vector.extract_strided_slice %1 {offsets = [0, 71], sizes = [4, 441], strides = [1, 1]} : vector<4x512xf32> to vector<4x441xf32>
    %169 = vector.extract_strided_slice %1 {offsets = [0, 0], sizes = [4, 71], strides = [1, 1]} : vector<4x512xf32> to vector<4x71xf32>
    %170 = tpu.concatenate %168, %169 in 1 : vector<4x441xf32>, vector<4x71xf32> -> vector<4x512xf32>
    %171 = vector.extract_strided_slice %2 {offsets = [24, 0], sizes = [1, 512], strides = [1, 1]} : vector<27x512xf32> to vector<1x512xf32>
    %172 = vector.broadcast %171 : vector<1x512xf32> to vector<4x512xf32>
    %173 = arith.mulf %170, %172 : vector<4x512xf32>
    %c96 = arith.constant 96 : index
    %c0_29 = arith.constant 0 : index
    %174 = vector.load %arg6[%c96, %c0_29] : memref<108x512xf32, #tpu.memory_space<vmem>>, vector<4x512xf32>
    tpu.vector_store %arg6[%c96, %c0_29], %173 {strides = array<i32>} : memref<108x512xf32, #tpu.memory_space<vmem>>, vector<4x512xf32>,
    %175 = vector.extract_strided_slice %1 {offsets = [0, 72], sizes = [4, 440], strides = [1, 1]} : vector<4x512xf32> to vector<4x440xf32>
    %176 = vector.extract_strided_slice %1 {offsets = [0, 0], sizes = [4, 72], strides = [1, 1]} : vector<4x512xf32> to vector<4x72xf32>
    %177 = tpu.concatenate %175, %176 in 1 : vector<4x440xf32>, vector<4x72xf32> -> vector<4x512xf32>
    %178 = vector.extract_strided_slice %2 {offsets = [25, 0], sizes = [1, 512], strides = [1, 1]} : vector<27x512xf32> to vector<1x512xf32>
    %179 = vector.broadcast %178 : vector<1x512xf32> to vector<4x512xf32>
    %180 = arith.mulf %177, %179 : vector<4x512xf32>
    %c100 = arith.constant 100 : index
    %c0_30 = arith.constant 0 : index
    %181 = vector.load %arg6[%c100, %c0_30] : memref<108x512xf32, #tpu.memory_space<vmem>>, vector<4x512xf32>
    tpu.vector_store %arg6[%c100, %c0_30], %180 {strides = array<i32>} : memref<108x512xf32, #tpu.memory_space<vmem>>, vector<4x512xf32>,
    %182 = vector.extract_strided_slice %1 {offsets = [0, 73], sizes = [4, 439], strides = [1, 1]} : vector<4x512xf32> to vector<4x439xf32>
    %183 = vector.extract_strided_slice %1 {offsets = [0, 0], sizes = [4, 73], strides = [1, 1]} : vector<4x512xf32> to vector<4x73xf32>
    %184 = tpu.concatenate %182, %183 in 1 : vector<4x439xf32>, vector<4x73xf32> -> vector<4x512xf32>
    %185 = vector.extract_strided_slice %2 {offsets = [26, 0], sizes = [1, 512], strides = [1, 1]} : vector<27x512xf32> to vector<1x512xf32>
    %186 = vector.broadcast %185 : vector<1x512xf32> to vector<4x512xf32>
    %187 = arith.mulf %184, %186 : vector<4x512xf32>
    %c104 = arith.constant 104 : index
    %c0_31 = arith.constant 0 : index
    %188 = vector.load %arg6[%c104, %c0_31] : memref<108x512xf32, #tpu.memory_space<vmem>>, vector<4x512xf32>
    tpu.vector_store %arg6[%c104, %c0_31], %187 {strides = array<i32>} : memref<108x512xf32, #tpu.memory_space<vmem>>, vector<4x512xf32>,
    %c0_32 = arith.constant 0 : index
    %c0_33 = arith.constant 0 : index
    %189 = vector.load %arg2[%c0_32, %c0_33] : memref<8x108xf32, #tpu.memory_space<vmem>>, vector<8x108xf32>
    %c0_34 = arith.constant 0 : index
    %c0_35 = arith.constant 0 : index
    %190 = vector.load %arg6[%c0_34, %c0_35] : memref<108x512xf32, #tpu.memory_space<vmem>>, vector<108x512xf32>
    %cst = arith.constant dense<0.000000e+00> : vector<8x512xf32>
    %191 = tpu.matmul %189, %190, %cst {dimension_numbers = #tpu.dot_dimension_numbers<[1], [0], [0], [1], [0, 0, 1, 1], [], []>} : vector<8x108xf32>, vector<108x512xf32>, vector<8x512xf32> -> vector<8x512xf32>
    %c0_36 = arith.constant 0 : index
    %c0_37 = arith.constant 0 : index
    %c0_38 = arith.constant 0 : index
    %192 = vector.load %arg4[%c0_36, %c0_37, %c0_38] : memref<1x8x512xf32, #tpu.memory_space<vmem>>, vector<1x8x512xf32>
    %193 = vector.shape_cast %192 : vector<1x8x512xf32> to vector<8x512xf32>
    %194 = vector.shape_cast %191 : vector<8x512xf32> to vector<1x8x512xf32>
    tpu.vector_store %arg4[%c0_36, %c0_37, %c0_38], %194 {strides = array<i32>} : memref<1x8x512xf32, #tpu.memory_space<vmem>>, vector<1x8x512xf32>,
    %cst_39 = arith.constant dense<0.000000e+00> : vector<8xf32>
    %195 = vector.multi_reduction <add>, %191, %cst_39 [1] : vector<8x512xf32> to vector<8xf32>
    %196 = vector.shape_cast %195 : vector<8xf32> to vector<8x1xf32>
    %c0_40 = arith.constant 0 : index
    %c0_41 = arith.constant 0 : index
    %c0_42 = arith.constant 0 : index
    %197 = vector.load %arg5[%c0_40, %c0_41, %c0_42] : memref<1x8x2xf32, #tpu.memory_space<vmem>>, vector<1x8x1xf32>
    %198 = vector.shape_cast %197 : vector<1x8x1xf32> to vector<8x1xf32>
    %199 = vector.shape_cast %196 : vector<8x1xf32> to vector<1x8x1xf32>
    tpu.vector_store %arg5[%c0_40, %c0_41, %c0_42], %199 {strides = array<i32>} : memref<1x8x2xf32, #tpu.memory_space<vmem>>, vector<1x8x1xf32>,
    %200 = arith.mulf %191, %191 : vector<8x512xf32>
    %cst_43 = arith.constant dense<0.000000e+00> : vector<8xf32>
    %201 = vector.multi_reduction <add>, %200, %cst_43 [1] : vector<8x512xf32> to vector<8xf32>
    %202 = vector.shape_cast %201 : vector<8xf32> to vector<8x1xf32>
    %c0_44 = arith.constant 0 : index
    %c0_45 = arith.constant 0 : index
    %c1 = arith.constant 1 : index
    %203 = vector.load %arg5[%c0_44, %c0_45, %c1] : memref<1x8x2xf32, #tpu.memory_space<vmem>>, vector<1x8x1xf32>
    %204 = vector.shape_cast %203 : vector<1x8x1xf32> to vector<8x1xf32>
    %205 = vector.shape_cast %202 : vector<8x1xf32> to vector<1x8x1xf32>
    tpu.vector_store %arg5[%c0_44, %c0_45, %c1], %205 {strides = array<i32>} : memref<1x8x2xf32, #tpu.memory_space<vmem>>, vector<1x8x1xf32>,
    return
  }
  func.func @transform_0(%arg0: i32) -> (i32, i32, i32) {
    %c0_i32 = arith.constant 0 : i32
    %c0_i32_0 = arith.constant 0 : i32
    %c0_i32_1 = arith.constant 0 : i32
    return %arg0, %c0_i32, %c0_i32_0 : i32, i32, i32
  }
  func.func @transform_1(%arg0: i32) -> (i32, i32) {
    %c0_i32 = arith.constant 0 : i32
    %c0_i32_0 = arith.constant 0 : i32
    %c0_i32_1 = arith.constant 0 : i32
    return %c0_i32, %c0_i32_0 : i32, i32
  }
  func.func @transform_2(%arg0: i32) -> (i32, i32) {
    %c0_i32 = arith.constant 0 : i32
    %c0_i32_0 = arith.constant 0 : i32
    %c0_i32_1 = arith.constant 0 : i32
    return %c0_i32, %c0_i32_0 : i32, i32
  }
  func.func @transform_3(%arg0: i32) -> (i32, i32, i32) {
    %c0_i32 = arith.constant 0 : i32
    %c0_i32_0 = arith.constant 0 : i32
    %c0_i32_1 = arith.constant 0 : i32
    return %arg0, %c0_i32, %c0_i32_0 : i32, i32, i32
  }
  func.func @transform_4(%arg0: i32) -> (i32, i32, i32) {
    %c0_i32 = arith.constant 0 : i32
    %c0_i32_0 = arith.constant 0 : i32
    %c0_i32_1 = arith.constant 0 : i32
    return %arg0, %c0_i32, %c0_i32_0 : i32, i32, i32
  }
}

</mosaic_0001>

<bundles_post_ra>
// kernel: tpu_custom_call.1
= control target key start
LH: loop header
LB: loop body
LE: loop exit
PB: predicated region body
PF: predicated region fallthrough
CT: control target
= control target key end

     0   :  { %10 = vsyncpa [#allocation4], 0  ;;  %s2991_s0 = inlined_call_operand.hbm [shape: f32[2,4,512], index: 0, kind: input, shape index: {}]   ;;  %s2992_s1 = inlined_call_operand.hbm [shape: f32[8,108], index: 1, kind: input, shape index: {}]   ;;  %s2993_s2 = inlined_call_operand.hbm [shape: f32[27,512], index: 2, kind: input, shape index: {}]   ;;  %s2994_s3 = inlined_call_operand.hbm [shape: f32[2,8,512], index: 3, kind: output, shape index: {0}]   ;;  %s2995_s4 = inlined_call_operand.vmem [shape: f32[2,8,2], index: 4, kind: output, shape index: {1}]  }
   0x1   :  { %12 = vsyncpa [#allocation4 + $0x1], 0 }
   0x2   :  { %13 = vsyncpa [#allocation7], 0 }
   0x3   :  { %14 = vsyncpa [#allocation5], 0 }
   0x4   :  { %16 = vsyncpa [#allocation5 + $0x1], 0  ;;  %s2152_s15 = smov 0   ;;  %s2154_s16 = smov 0  }
   0x5   :  { %s2156_s17 = smov 0   ;;  %s2158_s18 = smov 0  }
   0x6 LB: > { %s2173_s19 = sadd.s32 4294967295, %s2104_s18   ;;  %s1825_s20 = sadd.s32 4294967294, %s2104_s18   ;;  %s2104_s18 = sphi %s2158_s18, %s3008_s18   ;;  %s2100_s17 = sphi %s2156_s17, %s3007_s17   ;;  %s2096_s16 = sphi %s2154_s16, %s3006_s16   ;;  %s2092_s15 = sphi %s2152_s15, %s3005_s15  }
   0x7   : > { %p42_p0 = scmp.ne.s32.totalorder %s2096_s16, %s2092_s15  ;;  %p43_p1 = scmp.eq.s32.totalorder %s2173_s19, 0 }
   0x8   : > { %p108_p2 = scmp.eq.s32.totalorder %s2173_s19, 1  ;;  %p114_p3 = scmp.eq.s32.totalorder %s1825_s20, 1 }
   0x9   : > { %p2182_p4 = por %p43_p1, %p42_p0  ;;  %p1826_p5 = scmp.ge.s32.totalorder %s2104_s18, 1 }
   0xa   : > { %p2187_p6 = por %p114_p3, %p42_p0  ;;  %p147_p7 = scmp.lt.s32.totalorder %s2104_s18, 3 }
   0xb   : > { %s159_s25 = sshll.u32 %s2992_s1, 4  ;;  %s2106_s27 = smov [#allocation6]   ;;  %s160_s25 = int_to_ptr.hbm [resolvable:$true] %s159_s25 }
   0xc   : > { %p2195_p8 = pnand %p1826_p5, %p147_p7  ;;  %s161_s28 = sshll.u32 %s2106_s27, 4  ;;  %s162_s28 = int_to_ptr.vmem [resolvable:$true] %s161_s28 }
   0xd   : > { %s170_s5 = sshll.u32 %s2993_s2, 4  ;;  %s2107_s6 = smov [#allocation8]   ;;  %s171_s5 = int_to_ptr.hbm [resolvable:$true] %s170_s5 }
   0xe   : > { %p1866_p10 = pneg %p2195_p8  ;;  %s172_s7 = sshll.u32 %s2107_s6, 4  ;;  %s173_s7 = int_to_ptr.vmem [resolvable:$true] %s172_s7 }
   0xf   : > { %s2108_s8 = smov 512   ;;  %s2109_s9 = smov 32  }
  0x10   : > { %p1867_p11 = pnand %p1866_p10, %p43_p1  ;;  %s2208_s10 = sadd.s32 1, %s2104_s18  }
  0x11   : > { %s26_s11 = ssub.s32 %s2104_s18, %s2208_s10  ;;  %s29_s12 = sadd.s32 1, %s2100_s17 }
  0x12   : > { %1869 = dma.hbm_to_vmem [thread:$0]  (!%p1867_p11), %s160_s25, 128, %s162_s28, [#allocation7]  }
  0x13   : > { %1872 = dma.hbm_to_vmem [thread:$0]  (!%p1867_p11), %s171_s5, 2048, %s173_s7, [#allocation7], %s2108_s8, %s2108_s8, %s2109_s9  }
  0x14   : > { %p27_p12 = scmp.eq.s32.totalorder %s26_s11, 0  ;;  %p36_p13 = scmp.ne.s32.totalorder %s2100_s17, %s2096_s16 }
  0x15   : > { %p37_p0 = scmp.eq.s32.totalorder %s2104_s18, 0  ;;  %p1883_p7 = scmp.lt.s32.totalorder %s2104_s18, 2 }
  0x16   : > { %s2217_s13 = scalar_select %p27_p12, %s2100_s17, %s29_s12  }
  0x17   : > { %p38_p3 = por %p37_p0, %p36_p13  ;;  %p2221_p5 = por %p108_p2, %p36_p13 }
  0x18   : > { %s186_s20 = sand.u32 1, %s2100_s17   ;;  %s1852_s24 = sshll.u32 %s2104_s18, 4 }
  0x19   : > { %s1830_s23 = sshll.u32 %s186_s20, 4  ;;  %s195_s28 = scalar_lea.hbm %s2991_s0, %s1852_s24 }
  0x1a   : > { %s190_s29 = scalar_lea.vmem [#allocation3], %s1830_s23  ;;  %s197_s5 = sshll.u32 %s195_s28, 4  ;;  %s198_s5 = int_to_ptr.hbm [resolvable:$true] %s197_s5 }
  0x1b   : > { %s199_s30 = sshll.u32 %s190_s29, 4  ;;  %p2231_p10 = pnand %p1883_p7, %p38_p3  ;;  %s200_s30 = int_to_ptr.vmem [resolvable:$true] %s199_s30 }
  0x1c   : > { %s187_s7 = scalar_lea.sflag [#allocation4], %s186_s20  ;;  %s2004_s8 = sshra.s32 %s198_s5, 4  ;;  %s2005_s8 = int_to_ptr.hbm [resolvable:$true] %s2004_s8 }
  0x1d   : > { %s2006_s9 = scalar_lea.hbm %s2005_s8, 16  ;;  %p2008_p11 = pneg %p2231_p10 }
  0x1e   : > { %p2007_p2 = scmp.ne.s32.totalorder %s2005_s8, %s2006_s9  ;;  %s2011_s23 = scalar_lea.hbm %s2991_s0, 32 }
  0x1f   : > { %p2012_p0 = scmp.lt.s32.totalorder %s2005_s8, %s2991_s0  ;;  %p2013_p3 = scmp.lt.s32.totalorder %s2011_s23, %s2006_s9 }
  0x20   : > { %p2009_p12 = pnand %p2008_p11, %p2007_p2 }
  0x21   : > { %p2014_p7 = por %p2013_p3, %p2012_p0 }
  0x22   : > { %p2010_p13 = pneg %p2009_p12 }
  0x24   : > { %p2015_p9 = pnand %p2014_p7, %p2010_p13 }
  0x26   : > { %2018 = shalt.err (!%p2015_p9)
}
  0x27   : > { %1876 = dma.hbm_to_vmem [thread:$0]  (!%p2231_p10), %s198_s5, 256, %s200_s30, %s187_s7  }
  0x28   : > { %208 = sbr.rel (%p2195_p8) target bundleno = 902 (0x386), region = 32  ;;  %s2248_s20 = sand.u32 (!%p2195_p8), 1, %s2096_s16  }
  0x29   : > { %s1834_s27 = sshll.u32 (!%p2195_p8), %s2248_s20, 4  ;;  %s211_s28 = scalar_lea.sflag (!%p2195_p8), [#allocation4], %s2248_s20 }
  0x2a   : > { %s214_s29 = scalar_lea.vmem (!%p2195_p8), [#allocation3], %s1834_s27 }
  0x2d   : > { %2079 = dma.done.wait (%p2182_p4), %s211_s28, 256  }
  0x2e   : > { %2081 = vsyncadd (%p2182_p4), %s211_s28, 4294967040 }
  0x2f   : > { %2083 = dma.done.wait (%p43_p1), [#allocation7], 2176  }
  0x30   : > { %2085 = vsyncadd (%p43_p1), [#allocation7], 4294965120  ;;  %v2260_v0 = vld [vmem:[%s214_s29 + $0x8] sm:$0xff]  ;;  %v2264_v1 = vld [vmem:[%s214_s29] sm:$0xff]  ;;  %s2110_s26 = smov 73   ;;  %s2111_s21 = smov 72  }
  0x31   : > { %285 = vst [vmem:[#allocation1 + $0x10] ss:$2 sm:$0xff] %v2260_v0  ;;  %s2112_s30 = smov 71   ;;  %s2113_s5 = smov 65   ;;  %v2316_v37 = vld [vmem:[#allocation8 + $0x38] sm:$0xff]  ;;  %v2326_v42 = vld [vmem:[#allocation8 + $0x30] sm:$0xff] }
  0x32   : > { %277 = vst [vmem:[#allocation1] ss:$2 sm:$0xff] %v2260_v0  ;;  %s2114_s6 = smov 64   ;;  %s2115_s7 = smov 63   ;;  %v886_v40 = vperm.slane %v2316_v37, 5  ;;  %v885_v43 = vperm.slane %v2326_v42, 5 }
  0x33   : > { %s2116_s8 = smov 57   ;;  %s2117_s9 = smov 56   ;;  %vm893_vm0 = vcmask 1043456   ;;  %v2355_v61 = vld [vmem:[#allocation8 + $0x18] sm:$0xff]  ;;  %vm298_vm1 = vcmask 596992   ;;  %vm392_vm2 = vcmask 580608  }
  0x34   : > { %s2118_s11 = smov 55   ;;  %v892_v44 = vrot.slane %v886_v40, 4  ;;  %s2119_s12 = smov 9   ;;  %v310_v62 = vperm.slane %v2355_v61, 0  ;;  %vm339_vm3 = vcmask 588800   ;;  %vm433_vm4 = vcmask 531456  }
  0x35   : > { %s2120_s23 = smov 7   ;;  %s2121_s24 = smov 1   ;;  %vm486_vm5 = vcmask 523264   ;;  %vm527_vm6 = vcmask 515072   ;;  %vm580_vm7 = vcmask 465920   ;;  %vm674_vm8 = vcmask 449536  }
  0x36   : > { %v895_v47 = vsel %vm893_vm0, %v885_v43, %v892_v44  ;;  %s2122_s25 = smov 127   ;;  %s2123_s27 = smov 121   ;;  %vm621_vm9 = vcmask 457728   ;;  %vm715_vm10 = vcmask 72704   ;;  %vm2996_vm11 = vcmask 1039360  }
  0x37   : > { %v899_v51 = vmul.f32 %v895_v47, %v2260_v0  ;;  %s2124_s28 = smov 120   ;;  %s2125_s29 = smov 119   ;;  %vm974_vm12 = vcmask 990208   ;;  %vm1027_vm13 = vcmask 982016   ;;  %vm1068_vm14 = vcmask 973824  }
  0x38   : > { %v288_v2 = vld.sshfl [vmem:[#allocation1 + $0x10] sm:$0xff pattern:$0x75316420]  ;;  %v289_v3 = vld.sshfl [vmem:[#allocation1 + $0x18] sm:$0xff pattern:$0x75316420] }
  0x39   : > { %294 = vrot.lane.b32.xlu1 %v288_v2, %s2110_s26  ;;  %296 = vrot.lane.b32.xlu2 %v289_v3, %s2110_s26  ;;  %326 = vst [vmem:[#allocation1 + $0x10] ss:$2 sm:$0xff] %v2260_v0  ;;  %v278_v4 = vld.sshfl [vmem:[#allocation1 + $0x8] sm:$0xff pattern:$0x75316420]  ;;  %vm809_vm15 = vcmask 56320  }
  0x3a   : > { %279 = vrot.lane.b32.xlu0 %v278_v4, %s2110_s26  ;;  %283 = vst [vmem:[#allocation1] ss:$2 sm:$0xff] %v2264_v1 }
  0x40   : > { %v329_v5 = vld.sshfl [vmem:[#allocation1 + $0x10] sm:$0xff pattern:$0x75316420]  ;;  %v330_v6 = vld.sshfl [vmem:[#allocation1 + $0x18] sm:$0xff pattern:$0x75316420] }
  0x41   : > { %v287_v7 = vld.sshfl [vmem:[#allocation1 + $0x8] sm:$0xff pattern:$0x75316420]  ;;  %335 = vrot.lane.b32.xlu2 %v329_v5, %s2111_s21  ;;  %379 = vst [vmem:[#allocation1 + $0x10] ss:$2 sm:$0xff] %v2260_v0 }
  0x42   : > { %292 = vrot.lane.b32.xlu1 %v287_v7, %s2110_s26  ;;  %v286_v8 = vld.sshfl [vmem:[#allocation1] sm:$0xff pattern:$0x75316420] }
  0x43   : > { %290 = vrot.lane.b32.xlu0 %v286_v8, %s2110_s26  ;;  %319 = vst [vmem:[#allocation1] ss:$2 sm:$0xff] %v2260_v0 }
  0x48   : > { %v382_v9 = vld.sshfl [vmem:[#allocation1 + $0x10] sm:$0xff pattern:$0x75316420]  ;;  %v383_v10 = vld.sshfl [vmem:[#allocation1 + $0x18] sm:$0xff pattern:$0x75316420] }
  0x49   : > { %420 = vst [vmem:[#allocation1 + $0x10] ss:$2 sm:$0xff] %v2260_v0 }
  0x4a   : > { %388 = vrot.lane.b32.xlu1 %v382_v9, %s2112_s30  ;;  %v320_v11 = vld.sshfl [vmem:[#allocation1 + $0x8] sm:$0xff pattern:$0x75316420]  ;;  %v2364_v9 = vld [vmem:[#allocation8 + $0x10] sm:$0xff] }
  0x4b   : > { %337 = vrot.lane.b32.xlu0 %v330_v6, %s2111_s21  ;;  %321 = vrot.lane.b32.xlu2 %v320_v11, %s2111_s21  ;;  %324 = vst [vmem:[#allocation1] ss:$2 sm:$0xff] %v2264_v1  ;;  %v2368_v11 = vld [vmem:[#allocation8 + $0x8] sm:$0xff] }
  0x50   : > { %v423_v12 = vld.sshfl [vmem:[#allocation1 + $0x10] sm:$0xff pattern:$0x75316420]  ;;  %v424_v13 = vld.sshfl [vmem:[#allocation1 + $0x18] sm:$0xff pattern:$0x75316420] }
  0x51   : > { %473 = vst [vmem:[#allocation1 + $0x10] ss:$2 sm:$0xff] %v2260_v0 }
  0x52   : > { %v328_v14 = vld.sshfl [vmem:[#allocation1 + $0x8] sm:$0xff pattern:$0x75316420]  ;;  %v327_v15 = vld.sshfl [vmem:[#allocation1] sm:$0xff pattern:$0x75316420] }
  0x53   : > { %333 = vrot.lane.b32.xlu1 %v328_v14, %s2111_s21  ;;  %390 = vrot.lane.b32.xlu2 %v383_v10, %s2112_s30  ;;  %372 = vst [vmem:[#allocation1] ss:$2 sm:$0xff] %v2260_v0  ;;  %v2366_v10 = vld [vmem:[#allocation8] sm:$0xff]  ;;  %v308_v14 = vperm.slane %v2368_v11, 0 }
  0x54   : > { %331 = vrot.lane.b32.xlu0 %v327_v15, %s2111_s21 }
  0x58   : > { %v476_v16 = vld.sshfl [vmem:[#allocation1 + $0x10] sm:$0xff pattern:$0x75316420]  ;;  %v477_v17 = vld.sshfl [vmem:[#allocation1 + $0x18] sm:$0xff pattern:$0x75316420] }
  0x59   : > { %514 = vst [vmem:[#allocation1 + $0x10] ss:$2 sm:$0xff] %v2260_v0 }
  0x5a   : > { %v373_v18 = vld.sshfl [vmem:[#allocation1 + $0x8] sm:$0xff pattern:$0x75316420] }
  0x5b   : > { %431 = vrot.lane.b32.xlu1 %v424_v13, %s2113_s5  ;;  %482 = vrot.lane.b32.xlu2 %v476_v16, %s2114_s6  ;;  %377 = vst [vmem:[#allocation1] ss:$2 sm:$0xff] %v2264_v1  ;;  %v307_v13 = vperm.slane %v2366_v10, 0 }
  0x5c   : > { %429 = vrot.lane.b32.xlu0 %v423_v12, %s2113_s5  ;;  %v309_v12 = vperm.slane %v2364_v9, 0 }
  0x60   : > { %v517_v19 = vld.sshfl [vmem:[#allocation1 + $0x10] sm:$0xff pattern:$0x75316420]  ;;  %v518_v20 = vld.sshfl [vmem:[#allocation1 + $0x18] sm:$0xff pattern:$0x75316420] }
  0x61   : > { %567 = vst [vmem:[#allocation1 + $0x10] ss:$2 sm:$0xff] %v2260_v0 }
  0x62   : > { %v380_v21 = vld.sshfl [vmem:[#allocation1] sm:$0xff pattern:$0x75316420]  ;;  %v381_v22 = vld.sshfl [vmem:[#allocation1 + $0x8] sm:$0xff pattern:$0x75316420] }
  0x63   : > { %374 = vrot.lane.b32.xlu1 %v373_v18, %s2112_s30  ;;  %384 = vrot.lane.b32.xlu2 %v380_v21, %s2112_s30  ;;  %413 = vst [vmem:[#allocation1] ss:$2 sm:$0xff] %v2260_v0 }
  0x64   : > { %484 = vrot.lane.b32.xlu0 %v477_v17, %s2114_s6 }
  0x68   : > { %v571_v23 = vld.sshfl [vmem:[#allocation1 + $0x18] sm:$0xff pattern:$0x75316420]  ;;  %v570_v24 = vld.sshfl [vmem:[#allocation1 + $0x10] sm:$0xff pattern:$0x75316420] }
  0x69   : > { %608 = vst [vmem:[#allocation1 + $0x10] ss:$2 sm:$0xff] %v2260_v0 }
  0x6a   : > { %v414_v25 = vld.sshfl [vmem:[#allocation1 + $0x8] sm:$0xff pattern:$0x75316420] }
  0x6b   : > { %523 = vrot.lane.b32.xlu1 %v517_v19, %s2115_s7  ;;  %525 = vrot.lane.b32.xlu2 %v518_v20, %s2115_s7  ;;  %418 = vst [vmem:[#allocation1] ss:$2 sm:$0xff] %v2264_v1 }
  0x6c   : > { %386 = vrot.lane.b32.xlu0 %v381_v22, %s2112_s30 }
  0x70   : > { %v611_v26 = vld.sshfl [vmem:[#allocation1 + $0x10] sm:$0xff pattern:$0x75316420]  ;;  %v612_v27 = vld.sshfl [vmem:[#allocation1 + $0x18] sm:$0xff pattern:$0x75316420] }
  0x71   : > { %661 = vst [vmem:[#allocation1 + $0x10] ss:$2 sm:$0xff] %v2260_v0 }
  0x72   : > { %v422_v28 = vld.sshfl [vmem:[#allocation1 + $0x8] sm:$0xff pattern:$0x75316420]  ;;  %v421_v29 = vld.sshfl [vmem:[#allocation1] sm:$0xff pattern:$0x75316420] }
  0x73   : > { %578 = vrot.lane.b32.xlu1 %v571_v23, %s2116_s8  ;;  %427 = vrot.lane.b32.xlu2 %v422_v28, %s2113_s5  ;;  %466 = vst [vmem:[#allocation1] ss:$2 sm:$0xff] %v2260_v0  ;;  %v404_v28 = vperm.slane %v2355_v61, 2 }
  0x74   : > { %415 = vrot.lane.b32.xlu0 %v414_v25, %s2113_s5 }
  0x78   : > { %v664_v30 = vld.sshfl [vmem:[#allocation1 + $0x10] sm:$0xff pattern:$0x75316420]  ;;  %v665_v31 = vld.sshfl [vmem:[#allocation1 + $0x18] sm:$0xff pattern:$0x75316420] }
  0x79   : > { %702 = vst [vmem:[#allocation1 + $0x10] ss:$2 sm:$0xff] %v2260_v0 }
  0x7a   : > { %v467_v32 = vld.sshfl [vmem:[#allocation1 + $0x8] sm:$0xff pattern:$0x75316420] }
  0x7b   : > { %425 = vrot.lane.b32.xlu1 %v421_v29, %s2113_s5  ;;  %617 = vrot.lane.b32.xlu2 %v611_v26, %s2117_s9  ;;  %471 = vst [vmem:[#allocation1] ss:$2 sm:$0xff] %v2264_v1 }
  0x7c   : > { %576 = vrot.lane.b32.xlu0 %v570_v24, %s2116_s8 }
  0x80   : > { %v705_v33 = vld.sshfl [vmem:[#allocation1 + $0x10] sm:$0xff pattern:$0x75316420]  ;;  %v706_v34 = vld.sshfl [vmem:[#allocation1 + $0x18] sm:$0xff pattern:$0x75316420] }
  0x81   : > { %755 = vst [vmem:[#allocation1 + $0x10] ss:$2 sm:$0xff] %v2260_v0 }
  0x82   : > { %v475_v35 = vld.sshfl [vmem:[#allocation1 + $0x8] sm:$0xff pattern:$0x75316420]  ;;  %v474_v36 = vld.sshfl [vmem:[#allocation1] sm:$0xff pattern:$0x75316420] }
  0x83   : > { %670 = vrot.lane.b32.xlu1 %v664_v30, %s2118_s11  ;;  %468 = vrot.lane.b32.xlu2 %v467_v32, %s2114_s6  ;;  %507 = vst [vmem:[#allocation1] ss:$2 sm:$0xff] %v2260_v0  ;;  %v351_v30 = vperm.slane %v2355_v61, 1 }
  0x84   : > { %619 = vrot.lane.b32.xlu0 %v612_v27, %s2117_s9 }
  0x88   : > { %v2318_v38 = vld.sshfl [vmem:[#allocation1 + $0x10] sm:$0xff pattern:$0x75316420]  ;;  %v2320_v39 = vld.sshfl [vmem:[#allocation1 + $0x18] sm:$0xff pattern:$0x75316420] }
  0x89   : > { %796 = vst [vmem:[#allocation1 + $0x10] ss:$2 sm:$0xff] %v2260_v0 }
  0x8a   : > { %v508_v41 = vld.sshfl [vmem:[#allocation1 + $0x8] sm:$0xff pattern:$0x75316420] }
  0x8b   : > { %480 = vrot.lane.b32.xlu1 %v475_v35, %s2114_s6  ;;  %672 = vrot.lane.b32.xlu2 %v665_v31, %s2118_s11  ;;  %512 = vst [vmem:[#allocation1] ss:$2 sm:$0xff] %v2264_v1 }
  0x8c   : > { %478 = vrot.lane.b32.xlu0 %v474_v36, %s2114_s6 }
  0x90   : > { %v799_v45 = vld.sshfl [vmem:[#allocation1 + $0x10] sm:$0xff pattern:$0x75316420]  ;;  %v2331_v46 = vld.sshfl [vmem:[#allocation1 + $0x18] sm:$0xff pattern:$0x75316420] }
  0x91   : > { %849 = vst [vmem:[#allocation1 + $0x10] ss:$2 sm:$0xff] %v2260_v0 }
  0x92   : > { %v515_v48 = vld.sshfl [vmem:[#allocation1] sm:$0xff pattern:$0x75316420]  ;;  %v516_v49 = vld.sshfl [vmem:[#allocation1 + $0x8] sm:$0xff pattern:$0x75316420] }
  0x93   : > { %713 = vrot.lane.b32.xlu1 %v706_v34, %s2119_s12  ;;  %519 = vrot.lane.b32.xlu2 %v515_v48, %s2115_s7  ;;  %v297_v50 = vpop.permute.xlu2 %296  ;;  %560 = vst [vmem:[#allocation1] ss:$2 sm:$0xff] %v2260_v0 }
  0x94   : > { %711 = vrot.lane.b32.xlu0 %v705_v33, %s2119_s12 }
  0x98   : > { %v852_v52 = vld.sshfl [vmem:[#allocation1 + $0x10] sm:$0xff pattern:$0x75316420]  ;;  %v2340_v53 = vld.sshfl [vmem:[#allocation1 + $0x18] sm:$0xff pattern:$0x75316420] }
  0x99   : > { %905 = vst [vmem:[#allocation1 + $0x11] ss:$2 sm:$0xff] %v899_v51 }
  0x9a   : > { %v561_v54 = vld.sshfl [vmem:[#allocation1 + $0x8] sm:$0xff pattern:$0x75316420] }
  0x9b   : > { %509 = vrot.lane.b32.xlu1 %v508_v41, %s2115_s7  ;;  %805 = vrot.lane.b32.xlu2 %v799_v45, %s2120_s23  ;;  %v2344_v55 = vpop.permute.xlu2 %335  ;;  %565 = vst [vmem:[#allocation1] ss:$2 sm:$0xff] %v2264_v1  ;;  %v350_v45 = vperm.slane %v2364_v9, 1 }
  0x9c   : > { %521 = vrot.lane.b32.xlu0 %v516_v49, %s2115_s7  ;;  %v348_v49 = vperm.slane %v2366_v10, 1 }
  0xa0   : > { %v908_v56 = vld.sshfl [vmem:[#allocation1 + $0x10] sm:$0xff pattern:$0x75316420]  ;;  %v909_v57 = vld.sshfl [vmem:[#allocation1 + $0x18] sm:$0xff pattern:$0x75316420] }
  0xa1   : > { %916 = vst [vmem:[#allocation2 + $0x190] sm:$0xf0] %v908_v56 }
  0xa2   : > { %917 = vst [vmem:[#allocation2 + $0xb8] sm:$0xf0] %v909_v57  ;;  %v569_v58 = vld.sshfl [vmem:[#allocation1 + $0x8] sm:$0xff pattern:$0x75316420] }
  0xa3   : > { %920 = vst [vmem:[#allocation1 + $0x10] ss:$2 sm:$0xff] %v2260_v0  ;;  %858 = vrot.lane.b32.xlu1 %v852_v52, %s2121_s24  ;;  %574 = vrot.lane.b32.xlu2 %v569_v58, %s2116_s8  ;;  %v568_v59 = vld.sshfl [vmem:[#allocation1] sm:$0xff pattern:$0x75316420] }
  0xa4   : > { %562 = vrot.lane.b32.xlu0 %v561_v54, %s2116_s8  ;;  %601 = vst [vmem:[#allocation1] ss:$2 sm:$0xff] %v2260_v0 }
  0xa5   : > { %v2353_v60 = vpop.permute.xlu2 %321 }
  0xaa   : > { %v924_v63 = vld.sshfl [vmem:[#allocation1 + $0x18] sm:$0xff pattern:$0x75316420]  ;;  %v923_v2 = vld.sshfl [vmem:[#allocation1 + $0x10] sm:$0xff pattern:$0x75316420] }
  0xab   : > { %572 = vrot.lane.b32.xlu1 %v568_v59, %s2116_s8  ;;  %v295_v3 = vpop.permute.xlu1 %294  ;;  %v602_v4 = vld.sshfl [vmem:[#allocation1 + $0x8] sm:$0xff pattern:$0x75316420]  ;;  %961 = vst [vmem:[#allocation1 + $0x10] ss:$2 sm:$0xff] %v2260_v0 }
  0xac   : > { %v301_v5 = vsel %vm298_vm1, %v295_v3, %v297_v50  ;;  %931 = vrot.lane.b32.xlu0 %v924_v63, %s2122_s25  ;;  %603 = vrot.lane.b32.xlu2 %v602_v4, %s2117_s9  ;;  %606 = vst [vmem:[#allocation1] ss:$2 sm:$0xff] %v2264_v1  ;;  %v280_v6 = vpop.permute.xlu0 %279  ;;  %v349_v50 = vperm.slane %v2368_v11, 1 }
  0xad   : > { %v314_v7 = vmul.f32 %v310_v62, %v301_v5  ;;  %v391_v8 = vpop.permute.xlu2 %390 }
  0xaf   : > { %318 = vst [vmem:[#allocation2 + $0x18] sm:$0xf] %v314_v7  ;;  %v445_v7 = vperm.slane %v2355_v61, 3 }
  0xb2   : > { %v964_v15 = vld.sshfl [vmem:[#allocation1 + $0x10] sm:$0xff pattern:$0x75316420]  ;;  %v965_v16 = vld.sshfl [vmem:[#allocation1 + $0x18] sm:$0xff pattern:$0x75316420] }
  0xb3   : > { %v610_v17 = vld.sshfl [vmem:[#allocation1 + $0x8] sm:$0xff pattern:$0x75316420]  ;;  %v609_v18 = vld.sshfl [vmem:[#allocation1] sm:$0xff pattern:$0x75316420] }
  0xb4   : > { %615 = vrot.lane.b32.xlu1 %v610_v17, %s2117_s9  ;;  %v293_v19 = vpop.permute.xlu1 %292  ;;  %929 = vrot.lane.b32.xlu2 %v923_v2, %s2122_s25  ;;  %654 = vst [vmem:[#allocation1] ss:$2 sm:$0xff] %v2260_v0 }
  0xb5   : > { %v300_v20 = vsel %vm298_vm1, %v293_v19, %v295_v3  ;;  %613 = vrot.lane.b32.xlu0 %v609_v18, %s2117_s9  ;;  %v291_v21 = vpop.permute.xlu0 %290  ;;  %v2378_v22 = vpop.permute.xlu2 %482  ;;  %1014 = vst [vmem:[#allocation1 + $0x10] ss:$2 sm:$0xff] %v2260_v0 }
  0xb6   : > { %v313_v23 = vmul.f32 %v309_v12, %v300_v20  ;;  %v299_v24 = vsel %vm298_vm1, %v291_v21, %v293_v19  ;;  %v306_v25 = vsel %vm298_vm1, %v280_v6, %v291_v21 }
  0xb7   : > { %v311_v26 = vmul.f32 %v307_v13, %v306_v25  ;;  %v312_v27 = vmul.f32 %v308_v14, %v299_v24  ;;  %v498_v24 = vperm.slane %v2355_v61, 4 }
  0xb8   : > { %317 = vst [vmem:[#allocation2 + $0xd8] sm:$0xf] %v313_v23  ;;  %v401_v23 = vperm.slane %v2366_v10, 2 }
  0xb9   : > { %315 = vst [vmem:[#allocation2 + $0xb0] sm:$0xf] %v311_v26 }
  0xba   : > { %316 = vst [vmem:[#allocation2 + $0x1b0] sm:$0xf] %v312_v27 }
  0xbb   : > { %v655_v29 = vld.sshfl [vmem:[#allocation1 + $0x8] sm:$0xff pattern:$0x75316420] }
  0xbc   : > { %970 = vrot.lane.b32.xlu1 %v964_v15, %s2123_s27  ;;  %v2386_v31 = vpop.permute.xlu1 %388  ;;  %972 = vrot.lane.b32.xlu2 %v965_v16, %s2123_s27  ;;  %v1017_v32 = vld.sshfl [vmem:[#allocation1 + $0x10] sm:$0xff pattern:$0x75316420]  ;;  %659 = vst [vmem:[#allocation1] ss:$2 sm:$0xff] %v2264_v1 }
  0xbd   : > { %v395_v33 = vsel %vm392_vm2, %v2386_v31, %v391_v8  ;;  %1023 = vrot.lane.b32.xlu0 %v1017_v32, %s2124_s28  ;;  %v338_v34 = vpop.permute.xlu0 %337  ;;  %v2393_v35 = vpop.permute.xlu2 %384  ;;  %v1018_v36 = vld.sshfl [vmem:[#allocation1 + $0x18] sm:$0xff pattern:$0x75316420] }
  0xbe   : > { %v408_v40 = vmul.f32 %v404_v28, %v395_v33  ;;  %v342_v41 = vsel %vm339_vm3, %v2344_v55, %v338_v34  ;;  %1055 = vst [vmem:[#allocation1 + $0x10] ss:$2 sm:$0xff] %v2260_v0 }
  0xbf   : > { %v355_v43 = vmul.f32 %v351_v30, %v342_v41  ;;  %v539_v41 = vperm.slane %v2355_v61, 5 }
  0xc0   : > { %412 = vst [vmem:[#allocation2 + $0x48] sm:$0xf] %v408_v40 }
  0xc1   : > { %v363_v44 = vrot.slane %v355_v43, 4  ;;  %v402_v43 = vperm.slane %v2368_v11, 2 }
  0xc3   : > { %371 = vst [vmem:[#allocation2 + $0x18] sm:$0xf0] %v363_v44  ;;  %v663_v47 = vld.sshfl [vmem:[#allocation1 + $0x8] sm:$0xff pattern:$0x75316420]  ;;  %v403_v44 = vperm.slane %v2364_v9, 2 }
  0xc4   : > { %656 = vrot.lane.b32.xlu1 %v655_v29, %s2118_s11  ;;  %v662_v48 = vld.sshfl [vmem:[#allocation1] sm:$0xff pattern:$0x75316420] }
  0xc5   : > { %v334_v51 = vpop.permute.xlu1 %333  ;;  %668 = vrot.lane.b32.xlu0 %v663_v47, %s2118_s11  ;;  %666 = vrot.lane.b32.xlu2 %v662_v48, %s2118_s11  ;;  %695 = vst [vmem:[#allocation1] ss:$2 sm:$0xff] %v2260_v0  ;;  %v2405_v52 = vpop.permute.xlu2 %525  ;;  %v1059_v54 = vld.sshfl [vmem:[#allocation1 + $0x18] sm:$0xff pattern:$0x75316420] }
  0xc6   : > { %v341_v56 = vsel %vm339_vm3, %v334_v51, %v2344_v55  ;;  %v332_v57 = vpop.permute.xlu0 %331  ;;  %v1058_v58 = vld.sshfl [vmem:[#allocation1 + $0x10] sm:$0xff pattern:$0x75316420]  ;;  %v444_v55 = vperm.slane %v2364_v9, 3 }
  0xc7   : > { %v354_v59 = vmul.f32 %v350_v45, %v341_v56  ;;  %v340_v62 = vsel %vm339_vm3, %v332_v57, %v334_v51  ;;  %v347_v63 = vsel %vm339_vm3, %v2353_v60, %v332_v57  ;;  %1108 = vst [vmem:[#allocation1 + $0x10] ss:$2 sm:$0xff] %v2260_v0 }
  0xc8   : > { %v352_v2 = vmul.f32 %v348_v49, %v347_v63  ;;  %v353_v3 = vmul.f32 %v349_v50, %v340_v62 }
  0xc9   : > { %v362_v4 = vrot.slane %v354_v59, 4 }
  0xca   : > { %v360_v5 = vrot.slane %v352_v2, 4  ;;  %v361_v6 = vrot.slane %v353_v3, 4 }
  0xcb   : > { %370 = vst [vmem:[#allocation2 + $0xd8] sm:$0xf0] %v362_v4  ;;  %v442_v4 = vperm.slane %v2366_v10, 3 }
  0xcc   : > { %1025 = vrot.lane.b32.xlu1 %v1018_v36, %s2124_s28  ;;  %368 = vst [vmem:[#allocation2 + $0xb0] sm:$0xf0] %v360_v5  ;;  %v696_v8 = vld.sshfl [vmem:[#allocation1 + $0x8] sm:$0xff pattern:$0x75316420]  ;;  %v443_v5 = vperm.slane %v2368_v11, 3 }
  0xcd   : > { %v432_v12 = vpop.permute.xlu1 %431  ;;  %369 = vst [vmem:[#allocation2 + $0x1b0] sm:$0xf0] %v361_v6  ;;  %1064 = vrot.lane.b32.xlu0 %v1058_v58, %s2125_s29  ;;  %v2417_v60 = vpop.permute.xlu2 %427  ;;  %v592_v6 = vperm.slane %v2355_v61, 6 }
  0xce   : > { %v1111_v13 = vld.sshfl [vmem:[#allocation1 + $0x10] sm:$0xff pattern:$0x75316420]  ;;  %v430_v14 = vpop.permute.xlu0 %429  ;;  %700 = vst [vmem:[#allocation1] ss:$2 sm:$0xff] %v2264_v1 }
  0xcf   : > { %1117 = vrot.lane.b32.xlu2 %v1111_v13, %s2110_s26  ;;  %v436_v15 = vsel %vm433_vm4, %v430_v14, %v432_v12  ;;  %v435_v16 = vsel %vm433_vm4, %v2417_v60, %v430_v14  ;;  %v1112_v17 = vld.sshfl [vmem:[#allocation1 + $0x18] sm:$0xff pattern:$0x75316420] }
  0xd0   : > { %v449_v18 = vmul.f32 %v445_v7, %v436_v15  ;;  %v448_v19 = vmul.f32 %v444_v55, %v435_v16  ;;  %1148 = vst [vmem:[#allocation1 + $0x10] ss:$2 sm:$0xff] %v2260_v0 }
  0xd2   : > { %v457_v20 = vrot.slane %v449_v18, 4  ;;  %v456_v21 = vrot.slane %v448_v19, 4 }
  0xd4   : > { %1066 = vrot.lane.b32.xlu1 %v1059_v54, %s2125_s29  ;;  %465 = vst [vmem:[#allocation2 + $0x48] sm:$0xf0] %v457_v20 }
  0xd5   : > { %v375_v25 = vpop.permute.xlu1 %374  ;;  %464 = vst [vmem:[#allocation2 + $0x130] sm:$0xf0] %v456_v21  ;;  %697 = vrot.lane.b32.xlu0 %v696_v8, %s2119_s12  ;;  %v704_v26 = vld.sshfl [vmem:[#allocation1 + $0x8] sm:$0xff pattern:$0x75316420]  ;;  %v2429_v27 = vpop.permute.xlu2 %617 }
  0xd6   : > { %v400_v28 = vsel %vm392_vm2, %v375_v25, %v2393_v35  ;;  %v703_v29 = vld.sshfl [vmem:[#allocation1] sm:$0xff pattern:$0x75316420]  ;;  %v485_v30 = vpop.permute.xlu0 %484  ;;  %v633_v25 = vperm.slane %v2355_v61, 7 }
  0xd7   : > { %v405_v32 = vmul.f32 %v401_v23, %v400_v28  ;;  %709 = vrot.lane.b32.xlu2 %v704_v26, %s2119_s12  ;;  %748 = vst [vmem:[#allocation1] ss:$2 sm:$0xff] %v2260_v0  ;;  %v489_v33 = vsel %vm486_vm5, %v2378_v22, %v485_v30  ;;  %v1151_v36 = vld.sshfl [vmem:[#allocation1 + $0x10] sm:$0xff pattern:$0x75316420]  ;;  %v2482_v26 = vld [vmem:[#allocation8 + $0x28] sm:$0xff] }
  0xd8   : > { %v502_v34 = vmul.f32 %v498_v24, %v489_v33  ;;  %v1152_v40 = vld.sshfl [vmem:[#allocation1 + $0x18] sm:$0xff pattern:$0x75316420] }
  0xd9   : > { %409 = vst [vmem:[#allocation2 + $0x50] sm:$0xf] %v405_v32 }
  0xda   : > { %506 = vst [vmem:[#allocation2 + $0x98] sm:$0xf] %v502_v34 }
  0xdb   : > { %1200 = vst [vmem:[#allocation1 + $0x10] ss:$2 sm:$0xff] %v2260_v0 }
  0xdc   : > { %707 = vrot.lane.b32.xlu1 %v703_v29, %s2119_s12  ;;  %s2126_s12 = smov 8  }
  0xdd   : > { %v2442_v45 = vpop.permute.xlu1 %523  ;;  %1119 = vrot.lane.b32.xlu0 %v1112_v17, %s2110_s26  ;;  %v2445_v47 = vpop.permute.xlu2 %468 }
  0xde   : > { %v530_v48 = vsel %vm527_vm6, %v2442_v45, %v2405_v52  ;;  %v387_v49 = vpop.permute.xlu0 %386  ;;  %v749_v50 = vld.sshfl [vmem:[#allocation1 + $0x8] sm:$0xff pattern:$0x75316420] }
  0xdf   : > { %v543_v51 = vmul.f32 %v539_v41, %v530_v48  ;;  %1157 = vrot.lane.b32.xlu2 %v1151_v36, %s2111_s21  ;;  %v393_v54 = vsel %vm392_vm2, %v2393_v35, %v387_v49  ;;  %v394_v56 = vsel %vm392_vm2, %v387_v49, %v2386_v31  ;;  %753 = vst [vmem:[#allocation1] ss:$2 sm:$0xff] %v2264_v1  ;;  %v2498_v41 = vld [vmem:[#allocation8 + $0x20] sm:$0xff] }
  0xe0   : > { %v406_v57 = vmul.f32 %v402_v43, %v393_v54  ;;  %v407_v58 = vmul.f32 %v403_v44, %v394_v56  ;;  %v884_v43 = vperm.slane %v2482_v26, 5  ;;  %v883_v49 = vperm.slane %v2498_v41, 5 }
  0xe1   : > { %v551_v59 = vrot.slane %v543_v51, 4  ;;  %v495_v54 = vperm.slane %v2366_v10, 4  ;;  %v496_v56 = vperm.slane %v2368_v11, 4 }
  0xe2   : > { %v1203_v62 = vld.sshfl [vmem:[#allocation1 + $0x10] sm:$0xff pattern:$0x75316420]  ;;  %410 = vst [vmem:[#allocation2 + $0x168] sm:$0xf] %v406_v57  ;;  %v891_v51 = vrot.slane %v884_v43, 4 }
  0xe3   : > { %559 = vst [vmem:[#allocation2 + $0x98] sm:$0xf0] %v551_v59  ;;  %v1204_v52 = vld.sshfl [vmem:[#allocation1 + $0x18] sm:$0xff pattern:$0x75316420]  ;;  %v591_v57 = vperm.slane %v2364_v9, 6 }
  0xe4   : > { %1209 = vrot.lane.b32.xlu1 %v1203_v62, %s2112_s30  ;;  %411 = vst [vmem:[#allocation2 + $0x130] sm:$0xf] %v407_v58 }
  0xe5   : > { %v579_v63 = vpop.permute.xlu1 %578  ;;  %1159 = vrot.lane.b32.xlu0 %v1152_v40, %s2111_s21  ;;  %1240 = vst [vmem:[#allocation1 + $0x10] ss:$2 sm:$0xff] %v2260_v0  ;;  %v673_v35 = vpop.permute.xlu2 %672 }
  0xe6   : > { %v416_v2 = vpop.permute.xlu0 %415  ;;  %v2459_v31 = vld.sshfl [vmem:[#allocation1] sm:$0xff pattern:$0x75316420]  ;;  %v2462_v3 = vld.sshfl [vmem:[#allocation1 + $0x8] sm:$0xff pattern:$0x75316420] }
  0xe7   : > { %750 = vrot.lane.b32.xlu2 %v749_v50, %s2126_s12  ;;  %789 = vst [vmem:[#allocation1] ss:$2 sm:$0xff] %v2260_v0  ;;  %v497_v50 = vperm.slane %v2364_v9, 4 }
  0xec   : > { %v1243_v7 = vld.sshfl [vmem:[#allocation1 + $0x10] sm:$0xff pattern:$0x75316420]  ;;  %v1244_v55 = vld.sshfl [vmem:[#allocation1 + $0x18] sm:$0xff pattern:$0x75316420] }
  0xed   : > { %1249 = vrot.lane.b32.xlu1 %v1243_v7, %s2113_s5  ;;  %v426_v8 = vpop.permute.xlu1 %425  ;;  %1292 = vst [vmem:[#allocation1 + $0x10] ss:$2 sm:$0xff] %v2260_v0  ;;  %v2470_v12 = vpop.permute.xlu2 %519 }
  0xee   : > { %v434_v13 = vsel %vm433_vm4, %v426_v8, %v2417_v60  ;;  %v441_v14 = vsel %vm433_vm4, %v416_v2, %v426_v8  ;;  %v577_v15 = vpop.permute.xlu0 %576  ;;  %v2477_v19 = vld.sshfl [vmem:[#allocation1 + $0x8] sm:$0xff pattern:$0x75316420]  ;;  %v686_v60 = vperm.slane %v2316_v37, 0 }
  0xef   : > { %v446_v16 = vmul.f32 %v442_v4, %v441_v14  ;;  %v447_v17 = vmul.f32 %v443_v5, %v434_v13  ;;  %1211 = vrot.lane.b32.xlu2 %v1204_v52, %s2112_s30  ;;  %v583_v18 = vsel %vm580_vm7, %v577_v15, %v579_v63  ;;  %794 = vst [vmem:[#allocation1] ss:$2 sm:$0xff] %v2264_v1 }
  0xf0   : > { %v596_v20 = vmul.f32 %v592_v6, %v583_v18 }
  0xf1   : > { %v454_v21 = vrot.slane %v446_v16, 4  ;;  %v455_v23 = vrot.slane %v447_v17, 4 }
  0xf2   : > { %600 = vst [vmem:[#allocation2 + $0x60] sm:$0xf] %v596_v20 }
  0xf3   : > { %462 = vst [vmem:[#allocation2 + $0x50] sm:$0xf0] %v454_v21 }
  0xf4   : > { %463 = vst [vmem:[#allocation2 + $0x168] sm:$0xf0] %v455_v23  ;;  %v1295_v24 = vld.sshfl [vmem:[#allocation1 + $0x10] sm:$0xff pattern:$0x75316420] }
  0xf5   : > { %1301 = vrot.lane.b32.xlu0 %v1295_v24, %s2114_s6  ;;  %v1296_v28 = vld.sshfl [vmem:[#allocation1 + $0x18] sm:$0xff pattern:$0x75316420]  ;;  %v2485_v29 = vpop.permute.xlu1 %670  ;;  %v2487_v30 = vpop.permute.xlu2 %805 }
  0xf6   : > { %1332 = vst [vmem:[#allocation1 + $0x10] ss:$2 sm:$0xff] %v2260_v0  ;;  %1303 = vrot.lane.b32.xlu1 %v1296_v28, %s2114_s6  ;;  %v677_v32 = vsel %vm674_vm8, %v2485_v29, %v673_v35  ;;  %v620_v33 = vpop.permute.xlu0 %619  ;;  %v798_v36 = vld.sshfl [vmem:[#allocation1 + $0x8] sm:$0xff pattern:$0x75316420]  ;;  %v537_v28 = vperm.slane %v2368_v11, 5 }
  0xf7   : > { %v690_v34 = vmul.f32 %v686_v60, %v677_v32  ;;  %1251 = vrot.lane.b32.xlu2 %v1244_v55, %s2113_s5  ;;  %v624_v61 = vsel %vm621_vm9, %v2429_v27, %v620_v33  ;;  %v2496_v40 = vld.sshfl [vmem:[#allocation1] sm:$0xff pattern:$0x75316420]  ;;  %v538_v32 = vperm.slane %v2364_v9, 5 }
  0xf8   : > { %v637_v44 = vmul.f32 %v633_v25, %v624_v61  ;;  %842 = vst [vmem:[#allocation1] ss:$2 sm:$0xff] %v2260_v0  ;;  %v536_v25 = vperm.slane %v2366_v10, 5 }
  0xf9   : > { %694 = vst [vmem:[#allocation2 + $0x140] sm:$0xf] %v690_v34 }
  0xfa   : > { %v645_v48 = vrot.slane %v637_v44, 4 }
  0xfc   : > { %653 = vst [vmem:[#allocation2 + $0x60] sm:$0xf0] %v645_v48 }
  0xfd   : > { %v1335_v58 = vld.sshfl [vmem:[#allocation1 + $0x10] sm:$0xff pattern:$0x75316420]  ;;  %v1336_v59 = vld.sshfl [vmem:[#allocation1 + $0x18] sm:$0xff pattern:$0x75316420]  ;;  %v481_v62 = vpop.permute.xlu1 %480  ;;  %v2507_v52 = vpop.permute.xlu2 %574 }
  0xfe   : > { %1384 = vst [vmem:[#allocation1 + $0x10] ss:$2 sm:$0xff] %v2260_v0  ;;  %1341 = vrot.lane.b32.xlu1 %v1335_v58, %s2115_s7  ;;  %v488_v63 = vsel %vm486_vm5, %v481_v62, %v2378_v22  ;;  %v479_v35 = vpop.permute.xlu0 %478  ;;  %v582_v2 = vsel %vm580_vm7, %v2507_v52, %v577_v15  ;;  %v894_v22 = vsel %vm893_vm0, %v883_v49, %v891_v51  ;;  %v727_v15 = vperm.slane %v2316_v37, 1 }
  0xff   : > { %v501_v4 = vmul.f32 %v497_v50, %v488_v63  ;;  %1343 = vrot.lane.b32.xlu2 %v1336_v59, %s2115_s7  ;;  %v487_v5 = vsel %vm486_vm5, %v479_v35, %v481_v62  ;;  %v494_v6 = vsel %vm486_vm5, %v2445_v47, %v479_v35  ;;  %v2519_v7 = vld.sshfl [vmem:[#allocation1 + $0x8] sm:$0xff pattern:$0x75316420]  ;;  %v595_v13 = vmul.f32 %v591_v57, %v582_v2 }
 0x100   : > { %v499_v55 = vmul.f32 %v495_v54, %v494_v6  ;;  %v500_v8 = vmul.f32 %v496_v56, %v487_v5  ;;  %847 = vst [vmem:[#allocation1] ss:$2 sm:$0xff] %v2264_v1  ;;  %v898_v14 = vmul.f32 %v894_v22, %v2264_v1  ;;  %v589_v2 = vperm.slane %v2366_v10, 6 }
 0x101   : > { %505 = vst [vmem:[#allocation2 + $0x118] sm:$0xf] %v501_v4  ;;  %v590_v4 = vperm.slane %v2368_v11, 6  ;;  %v949_v5 = vperm.slane %v2326_v42, 6 }
 0x102   : > { %503 = vst [vmem:[#allocation2 + $0x180] sm:$0xf] %v499_v55 }
 0x103   : > { %504 = vst [vmem:[#allocation2 + $0x110] sm:$0xf] %v500_v8 }
 0x104   : > { %599 = vst [vmem:[#allocation2 + $0x108] sm:$0xf] %v595_v13 }
 0x105   : > { %v1387_v16 = vld.sshfl [vmem:[#allocation1 + $0x10] sm:$0xff pattern:$0x75316420]  ;;  %v1388_v47 = vld.sshfl [vmem:[#allocation1 + $0x18] sm:$0xff pattern:$0x75316420]  ;;  %v714_v17 = vpop.permute.xlu1 %713 }
 0x106   : > { %1393 = vrot.lane.b32.xlu0 %v1387_v16, %s2116_s8  ;;  %1424 = vst [vmem:[#allocation1 + $0x10] ss:$2 sm:$0xff] %v2260_v0  ;;  %803 = vrot.lane.b32.xlu1 %v798_v36, %s2120_s23  ;;  %v2528_v18 = vpop.permute.xlu0 %711  ;;  %v2530_v20 = vpop.permute.xlu2 %603 }
 0x107   : > { %764 = vrot.lane.b32.xlu2 %v2318_v38, %s2126_s12  ;;  %v718_v21 = vsel %vm715_vm10, %v2528_v18, %v714_v17  ;;  %v851_v37 = vld.sshfl [vmem:[#allocation1 + $0x8] sm:$0xff pattern:$0x75316420]  ;;  %v2536_v23 = vld.sshfl [vmem:[#allocation1] sm:$0xff pattern:$0x75316420] }
 0x108   : > { %v731_v60 = vmul.f32 %v727_v15, %v718_v21  ;;  %903 = vst [vmem:[#allocation1 + $0x1] ss:$2 sm:$0xff] %v898_v14  ;;  %v630_v21 = vperm.slane %v2366_v10, 7 }
 0x10a   : > { %v739_v24 = vrot.slane %v731_v60, 4 }
 0x10c   : > { %747 = vst [vmem:[#allocation2 + $0x140] sm:$0xf0] %v739_v24 }
 0x10d   : > { %v1427_v33 = vld.sshfl [vmem:[#allocation1 + $0x10] sm:$0xff pattern:$0x75316420]  ;;  %v510_v34 = vpop.permute.xlu1 %509  ;;  %v1428_v61 = vld.sshfl [vmem:[#allocation1 + $0x18] sm:$0xff pattern:$0x75316420] }
 0x10e   : > { %1433 = vrot.lane.b32.xlu0 %v1427_v33, %s2117_s9  ;;  %1395 = vrot.lane.b32.xlu1 %v1388_v47, %s2116_s8  ;;  %v535_v38 = vsel %vm527_vm6, %v510_v34, %v2470_v12  ;;  %1476 = vst [vmem:[#allocation1 + $0x10] ss:$2 sm:$0xff] %v2260_v0  ;;  %v522_v36 = vpop.permute.xlu0 %521  ;;  %v2546_v43 = vpop.permute.xlu2 %929 }
 0x10f   : > { %v540_v44 = vmul.f32 %v536_v25, %v535_v38  ;;  %v906_v48 = vld.sshfl [vmem:[#allocation1] sm:$0xff pattern:$0x75316420]  ;;  %v907_v49 = vld.sshfl [vmem:[#allocation1 + $0x8] sm:$0xff pattern:$0x75316420]  ;;  %v528_v50 = vsel %vm527_vm6, %v2470_v12, %v522_v36  ;;  %v529_v51 = vsel %vm527_vm6, %v522_v36, %v2442_v45 }
 0x110   : > { %914 = vst [vmem:[#allocation2 + $0xe8] sm:$0xf0] %v906_v48  ;;  %v541_v54 = vmul.f32 %v537_v28, %v528_v50  ;;  %v542_v56 = vmul.f32 %v538_v32, %v529_v51  ;;  %v726_v48 = vperm.slane %v2326_v42, 1 }
 0x111   : > { %v548_v57 = vrot.slane %v540_v44, 4  ;;  %915 = vst [vmem:[#allocation2 + $0xf8] sm:$0xf0] %v907_v49 }
 0x112   : > { %918 = vst [vmem:[#allocation1] ss:$2 sm:$0xff] %v2264_v1  ;;  %v549_v0 = vrot.slane %v541_v54, 4  ;;  %v550_v58 = vrot.slane %v542_v56, 4 }
 0x113   : > { %556 = vst [vmem:[#allocation2 + $0x180] sm:$0xf0] %v548_v57 }
 0x114   : > { %557 = vst [vmem:[#allocation2 + $0x110] sm:$0xf0] %v549_v0  ;;  %v683_v0 = vperm.slane %v2498_v41, 0 }
 0x115   : > { %v1479_v59 = vld.sshfl [vmem:[#allocation1 + $0x10] sm:$0xff pattern:$0x75316420]  ;;  %v2553_v62 = vpop.permute.xlu1 %858  ;;  %558 = vst [vmem:[#allocation2 + $0x118] sm:$0xf0] %v550_v58 }
 0x116   : > { %807 = vrot.lane.b32.xlu0 %v2331_v46, %s2120_s23  ;;  %1485 = vrot.lane.b32.xlu2 %v1479_v59, %s2118_s11  ;;  %v563_v45 = vpop.permute.xlu0 %562  ;;  %v2558_v12 = vpop.permute.xlu2 %972  ;;  %v1480_v17 = vld.sshfl [vmem:[#allocation1 + $0x18] sm:$0xff pattern:$0x75316420]  ;;  %v684_v59 = vperm.slane %v2482_v26, 0 }
 0x117   : > { %1435 = vrot.lane.b32.xlu1 %v1428_v61, %s2117_s9 }
 0x119   : > { %v921_v63 = vld.sshfl [vmem:[#allocation1] sm:$0xff pattern:$0x75316420]  ;;  %v2561_v35 = vld.sshfl [vmem:[#allocation1 + $0x8] sm:$0xff pattern:$0x75316420] }
 0x11a   : > { %941 = vst [vmem:[#allocation1] ss:$2 sm:$0xff] %v2264_v1 }
 0x11d   : > { %v573_v46 = vpop.permute.xlu1 %572 }
 0x11e   : > { %856 = vrot.lane.b32.xlu0 %v851_v37, %s2121_s24  ;;  %925 = vrot.lane.b32.xlu2 %v921_v63, %s2122_s25  ;;  %v581_v6 = vsel %vm580_vm7, %v573_v46, %v2507_v52  ;;  %v588_v55 = vsel %vm580_vm7, %v563_v45, %v573_v46  ;;  %v2572_v8 = vpop.permute.xlu0 %931  ;;  %v632_v52 = vperm.slane %v2364_v9, 7  ;;  %v685_v63 = vperm.slane %v2326_v42, 0 }
 0x11f   : > { %762 = vrot.lane.b32.xlu1 %v2462_v3, %s2126_s12  ;;  %v593_v13 = vmul.f32 %v589_v2, %v588_v55  ;;  %v594_v22 = vmul.f32 %v590_v4, %v581_v6  ;;  %v936_v14 = vsel %vm2996_vm11, %v2546_v43, %v2572_v8  ;;  %v667_v15 = vpop.permute.xlu2 %666  ;;  %v631_v3 = vperm.slane %v2368_v11, 7 }
 0x120   : > { %v953_v16 = vmul.f32 %v949_v5, %v936_v14 }
 0x121   : > { %597 = vst [vmem:[#allocation2 + $0x120] sm:$0xf] %v593_v13  ;;  %v942_v47 = vld.sshfl [vmem:[#allocation1] sm:$0xff pattern:$0x75316420] }
 0x122   : > { %598 = vst [vmem:[#allocation2 + $0x150] sm:$0xf] %v594_v22  ;;  %v2619_v13 = vld [vmem:[#allocation8 + $0x50] sm:$0xff] }
 0x123   : > { %959 = vst [vmem:[#allocation1] ss:$2 sm:$0xff] %v2264_v1 }
 0x124   : > { %957 = vst [vmem:[#allocation2 + $0x178] sm:$0xf] %v953_v16 }
 0x126   : > { %1487 = vrot.lane.b32.xlu0 %v1480_v17, %s2118_s11  ;;  %943 = vrot.lane.b32.xlu2 %v942_v47, %s2122_s25  ;;  %v616_v37 = vpop.permute.xlu1 %615 }
 0x127   : > { %860 = vrot.lane.b32.xlu1 %v2340_v53, %s2121_s24  ;;  %v623_v60 = vsel %vm621_vm9, %v616_v37, %v2429_v27  ;;  %v614_v24 = vpop.permute.xlu0 %613  ;;  %v990_v53 = vperm.slane %v2326_v42, 7  ;;  %v1043_v42 = vperm.slane %v2619_v13, 0 }
 0x128   : > { %v636_v25 = vmul.f32 %v632_v52, %v623_v60  ;;  %v622_v28 = vsel %vm621_vm9, %v614_v24, %v616_v37  ;;  %v629_v9 = vsel %vm621_vm9, %v2530_v20, %v614_v24 }
 0x129   : > { %v634_v10 = vmul.f32 %v630_v21, %v629_v9  ;;  %v635_v11 = vmul.f32 %v631_v3, %v622_v28  ;;  %v2592_v32 = vpop.permute.xlu2 %1117  ;;  %v1084_v3 = vperm.slane %v2619_v13, 1 }
 0x12a   : > { %v644_v33 = vrot.slane %v636_v25, 4  ;;  %v963_v34 = vld.sshfl [vmem:[#allocation1 + $0x8] sm:$0xff pattern:$0x75316420] }
 0x12b   : > { %v962_v61 = vld.sshfl [vmem:[#allocation1] sm:$0xff pattern:$0x75316420]  ;;  %v642_v38 = vrot.slane %v634_v10, 4  ;;  %v643_v36 = vrot.slane %v635_v11, 4  ;;  %v724_v10 = vperm.slane %v2498_v41, 1 }
 0x12c   : > { %652 = vst [vmem:[#allocation2 + $0x108] sm:$0xf0] %v644_v33  ;;  %v725_v33 = vperm.slane %v2482_v26, 1 }
 0x12d   : > { %982 = vst [vmem:[#allocation1] ss:$2 sm:$0xff] %v2264_v1 }
 0x12e   : > { %966 = vrot.lane.b32.xlu0 %v962_v61, %s2123_s27  ;;  %v2597_v27 = vpop.permute.xlu1 %970  ;;  %650 = vst [vmem:[#allocation2 + $0x120] sm:$0xf0] %v642_v38  ;;  %v1136_v61 = vperm.slane %v2619_v13, 2 }
 0x12f   : > { %968 = vrot.lane.b32.xlu1 %v963_v34, %s2123_s27  ;;  %v977_v20 = vsel %vm974_vm12, %v2597_v27, %v2558_v12  ;;  %651 = vst [vmem:[#allocation2 + $0x150] sm:$0xf0] %v643_v36  ;;  %v2603_v44 = vpop.permute.xlu0 %1023 }
 0x130   : > { %v994_v49 = vmul.f32 %v990_v53, %v977_v20 }
 0x131   : > { %v710_v50 = vpop.permute.xlu2 %709 }
 0x132   : > { %v1002_v51 = vrot.slane %v994_v49, 4  ;;  %v717_v54 = vsel %vm715_vm10, %v710_v50, %v2528_v18 }
 0x133   : > { %v730_v56 = vmul.f32 %v726_v48, %v717_v54 }
 0x134   : > { %1010 = vst [vmem:[#allocation2 + $0x178] sm:$0xf0] %v1002_v51  ;;  %v983_v57 = vld.sshfl [vmem:[#allocation1] sm:$0xff pattern:$0x75316420] }
 0x135   : > { %1012 = vst [vmem:[#allocation1] ss:$2 sm:$0xff] %v2264_v1  ;;  %v738_v58 = vrot.slane %v730_v56, 4 }
 0x136   : > { %v657_v45 = vpop.permute.xlu1 %656 }
 0x137   : > { %984 = vrot.lane.b32.xlu1 %v983_v57, %s2123_s27  ;;  %v682_v2 = vsel %vm674_vm8, %v657_v45, %v667_v15  ;;  %746 = vst [vmem:[#allocation2 + $0x138] sm:$0xf0] %v738_v58  ;;  %v669_v4 = vpop.permute.xlu0 %668  ;;  %v1228_v58 = vperm.slane %v2619_v13, 4 }
 0x138   : > { %v687_v18 = vmul.f32 %v683_v0, %v682_v2  ;;  %v675_v5 = vsel %vm674_vm8, %v667_v15, %v669_v4  ;;  %v676_v46 = vsel %vm674_vm8, %v669_v4, %v2485_v29 }
 0x139   : > { %v688_v6 = vmul.f32 %v684_v59, %v675_v5  ;;  %v2617_v55 = vpop.permute.xlu2 %1157  ;;  %v689_v22 = vmul.f32 %v685_v63, %v676_v46  ;;  %v1176_v59 = vperm.slane %v2619_v13, 3 }
 0x13a   : > { %691 = vst [vmem:[#allocation2 + $0xe0] sm:$0xf] %v687_v18 }
 0x13b   : > { %692 = vst [vmem:[#allocation2 + $0x188] sm:$0xf] %v688_v6  ;;  %v1268_v6 = vperm.slane %v2619_v13, 5 }
 0x13c   : > { %v1016_v14 = vld.sshfl [vmem:[#allocation1 + $0x8] sm:$0xff pattern:$0x75316420]  ;;  %v1015_v16 = vld.sshfl [vmem:[#allocation1] sm:$0xff pattern:$0x75316420] }
 0x13d   : > { %1021 = vrot.lane.b32.xlu0 %v1016_v14, %s2124_s28  ;;  %1019 = vrot.lane.b32.xlu2 %v1015_v16, %s2124_s28  ;;  %1035 = vst [vmem:[#allocation1] ss:$2 sm:$0xff] %v2264_v1 }
 0x13e   : > { %v2625_v29 = vpop.permute.xlu1 %1025  ;;  %693 = vst [vmem:[#allocation2 + $0x138] sm:$0xf] %v689_v22 }
 0x13f   : > { %v1030_v15 = vsel %vm1027_vm13, %v2603_v44, %v2625_v29  ;;  %v2630_v47 = vpop.permute.xlu0 %1064 }
 0x140   : > { %v1047_v17 = vmul.f32 %v1043_v42, %v1030_v15 }
 0x141   : > { %v2632_v52 = vpop.permute.xlu2 %750 }
 0x142   : > { %1051 = vst [vmem:[#allocation2 + $0x148] sm:$0xf] %v1047_v17 }
 0x144   : > { %v1036_v21 = vld.sshfl [vmem:[#allocation1] sm:$0xff pattern:$0x75316420] }
 0x145   : > { %1037 = vrot.lane.b32.xlu2 %v1036_v21, %s2124_s28  ;;  %1053 = vst [vmem:[#allocation1] ss:$2 sm:$0xff] %v2264_v1  ;;  %s2054_s28 = scalar_lea.hbm %s2994_s3, 64 }
 0x146   : > { %v2637_v37 = vpop.permute.xlu1 %1066 }
 0x147   : > { %v1071_v60 = vsel %vm1068_vm14, %v2630_v47, %v2637_v37  ;;  %v698_v24 = vpop.permute.xlu0 %697 }
 0x148   : > { %v1088_v25 = vmul.f32 %v1084_v3, %v1071_v60  ;;  %v1320_v60 = vperm.slane %v2619_v13, 6 }
 0x149   : > { %v2642_v28 = vpop.permute.xlu2 %1211 }
 0x14a   : > { %v1096_v9 = vrot.slane %v1088_v25, 4 }
 0x14c   : > { %v1057_v11 = vld.sshfl [vmem:[#allocation1 + $0x8] sm:$0xff pattern:$0x75316420]  ;;  %1104 = vst [vmem:[#allocation2 + $0x148] sm:$0xf0] %v1096_v9 }
 0x14d   : > { %1062 = vrot.lane.b32.xlu1 %v1057_v11, %s2125_s29  ;;  %v1056_v34 = vld.sshfl [vmem:[#allocation1] sm:$0xff pattern:$0x75316420] }
 0x14e   : > { %1060 = vrot.lane.b32.xlu0 %v1056_v34, %s2125_s29  ;;  %1076 = vst [vmem:[#allocation1] ss:$2 sm:$0xff] %v2264_v1  ;;  %v708_v38 = vpop.permute.xlu1 %707 }
 0x14f   : > { %v716_v36 = vsel %vm715_vm10, %v708_v38, %v710_v50  ;;  %v723_v53 = vsel %vm715_vm10, %v698_v24, %v708_v38  ;;  %v2652_v20 = vpop.permute.xlu0 %1119  ;;  %vm862_vm10 = vcmask 7168  }
 0x150   : > { %v728_v48 = vmul.f32 %v724_v10, %v723_v53  ;;  %v729_v49 = vmul.f32 %v725_v33, %v716_v36  ;;  %v1123_v51 = vsel %vm298_vm1, %v2592_v32, %v2652_v20 }
 0x151   : > { %v1140_v54 = vmul.f32 %v1136_v61, %v1123_v51  ;;  %v2657_v0 = vpop.permute.xlu2 %1251  ;;  %v1360_v61 = vperm.slane %v2619_v13, 7 }
 0x152   : > { %v736_v56 = vrot.slane %v728_v48, 4  ;;  %v737_v57 = vrot.slane %v729_v49, 4 }
 0x153   : > { %1144 = vst [vmem:[#allocation2 + $0xd0] sm:$0xf] %v1140_v54  ;;  %v1940_v54 = vld [vmem:[#allocation8 + $0x30] sm:$0xff] }
 0x154   : > { %744 = vst [vmem:[#allocation2 + $0xe0] sm:$0xf0] %v736_v56  ;;  %v820_v56 = vperm.slane %v1940_v54, 3 }
 0x155   : > { %v1077_v50 = vld.sshfl [vmem:[#allocation1] sm:$0xff pattern:$0x75316420]  ;;  %745 = vst [vmem:[#allocation2 + $0x188] sm:$0xf0] %v737_v57 }
 0x156   : > { %1078 = vrot.lane.b32.xlu2 %v1077_v50, %s2125_s29  ;;  %1106 = vst [vmem:[#allocation1] ss:$2 sm:$0xff] %v2264_v1  ;;  %v2663_v45 = vpop.permute.xlu1 %1209 }
 0x157   : > { %v1215_v63 = vsel %vm392_vm2, %v2663_v45, %v2642_v28  ;;  %v2668_v2 = vpop.permute.xlu0 %1159 }
 0x158   : > { %v1232_v4 = vmul.f32 %v1228_v58, %v1215_v63  ;;  %v1163_v18 = vsel %vm339_vm3, %v2617_v55, %v2668_v2 }
 0x159   : > { %v1180_v5 = vmul.f32 %v1176_v59, %v1163_v18  ;;  %v2674_v22 = vpop.permute.xlu2 %1343 }
 0x15a   : > { %1236 = vst [vmem:[#allocation2 + $0x160] sm:$0xf] %v1232_v4  ;;  %v274_v4 = vld [vmem:[#allocation8 + $0x70] sm:$0x7] }
 0x15b   : > { %v1188_v46 = vrot.slane %v1180_v5, 4 }
 0x15d   : > { %v1110_v42 = vld.sshfl [vmem:[#allocation1 + $0x8] sm:$0xff pattern:$0x75316420]  ;;  %v1109_v14 = vld.sshfl [vmem:[#allocation1] sm:$0xff pattern:$0x75316420] }
 0x15e   : > { %1115 = vrot.lane.b32.xlu0 %v1110_v42, %s2110_s26  ;;  %1113 = vrot.lane.b32.xlu2 %v1109_v14, %s2110_s26  ;;  %1128 = vst [vmem:[#allocation1] ss:$2 sm:$0xff] %v2264_v1 }
 0x15f   : > { %1196 = vst [vmem:[#allocation2 + $0xd0] sm:$0xf0] %v1188_v46  ;;  %v2679_v16 = vpop.permute.xlu1 %1249  ;;  %v1412_v46 = vperm.slane %v274_v4, 0 }
 0x160   : > { %v1255_v15 = vsel %vm433_vm4, %v2679_v16, %v2657_v0 }
 0x161   : > { %v1272_v17 = vmul.f32 %v1268_v6, %v1255_v15  ;;  %v2687_v24 = vpop.permute.xlu2 %764  ;;  %v2721_v6 = vld [vmem:[#allocation8 + $0x38] sm:$0xff] }
 0x162   : > { %v950_v42 = vperm.slane %v2721_v6, 6 }
 0x163   : > { %v1280_v21 = vrot.slane %v1272_v17, 4 }
 0x165   : > { %v1129_v3 = vld.sshfl [vmem:[#allocation1] sm:$0xff pattern:$0x75316420]  ;;  %1288 = vst [vmem:[#allocation2 + $0x160] sm:$0xf0] %v1280_v21 }
 0x166   : > { %1130 = vrot.lane.b32.xlu0 %v1129_v3, %s2110_s26  ;;  %1146 = vst [vmem:[#allocation1] ss:$2 sm:$0xff] %v2264_v1  ;;  %s1837_s26 = sshll.u32 %s2248_s20, 5 }
 0x167   : > { %v2689_v25 = vpop.permute.xlu0 %1301 }
 0x168   : > { %v2691_v9 = vpop.permute.xlu1 %1303 }
 0x169   : > { %v1307_v10 = vsel %vm486_vm5, %v2689_v25, %v2691_v9 }
 0x16a   : > { %v1324_v11 = vmul.f32 %v1320_v60, %v1307_v10 }
 0x16c   : > { %1328 = vst [vmem:[#allocation2 + $0xa0] sm:$0xf] %v1324_v11 }
 0x16d   : > { %v1150_v33 = vld.sshfl [vmem:[#allocation1 + $0x8] sm:$0xff pattern:$0x75316420]  ;;  %v1149_v34 = vld.sshfl [vmem:[#allocation1] sm:$0xff pattern:$0x75316420] }
 0x16e   : > { %1155 = vrot.lane.b32.xlu2 %v1150_v33, %s2111_s21  ;;  %1153 = vrot.lane.b32.xlu1 %v1149_v34, %s2111_s21  ;;  %1168 = vst [vmem:[#allocation1] ss:$2 sm:$0xff] %v2264_v1  ;;  %v821_v33 = vperm.slane %v2721_v6, 3  ;;  %v1452_v34 = vperm.slane %v274_v4, 1 }
 0x170   : > { %v2700_v38 = vpop.permute.xlu1 %1341  ;;  %v2702_v36 = vpop.permute.xlu2 %1485 }
 0x171   : > { %v1347_v53 = vsel %vm527_vm6, %v2700_v38, %v2674_v22 }
 0x172   : > { %v1364_v48 = vmul.f32 %v1360_v61, %v1347_v53 }
 0x174   : > { %v1372_v49 = vrot.slane %v1364_v48, 4 }
 0x175   : > { %v1169_v51 = vld.sshfl [vmem:[#allocation1] sm:$0xff pattern:$0x75316420] }
 0x176   : > { %1170 = vrot.lane.b32.xlu1 %v1169_v51, %s2111_s21  ;;  %1198 = vst [vmem:[#allocation1] ss:$2 sm:$0xff] %v2264_v1  ;;  %s247_s21 = scalar_lea.vmem [#allocation9], %s1837_s26 }
 0x177   : > { %1380 = vst [vmem:[#allocation2 + $0xa0] sm:$0xf0] %v1372_v49 }
 0x178   : > { %v2709_v13 = vpop.permute.xlu0 %1393  ;;  %v2711_v57 = vpop.permute.xlu1 %803 }
 0x179   : > { %v811_v58 = vsel %vm809_vm15, %v2711_v57, %v2487_v30  ;;  %v2716_v50 = vpop.permute.xlu2 %925 }
 0x17a   : > { %v824_v59 = vmul.f32 %v820_v56, %v811_v58 }
 0x17c   : > { %v832_v63 = vrot.slane %v824_v59, 4  ;;  %v873_v59 = vperm.slane %v1940_v54, 4 }
 0x17d   : > { %v1202_v18 = vld.sshfl [vmem:[#allocation1 + $0x8] sm:$0xff pattern:$0x75316420]  ;;  %v1201_v5 = vld.sshfl [vmem:[#allocation1] sm:$0xff pattern:$0x75316420] }
 0x17e   : > { %1207 = vrot.lane.b32.xlu1 %v1202_v18, %s2112_s30  ;;  %840 = vst [vmem:[#allocation2 + $0x1b8] sm:$0xf0] %v832_v63  ;;  %1205 = vrot.lane.b32.xlu0 %v1201_v5, %s2112_s30 }
 0x17f   : > { %1220 = vst [vmem:[#allocation1] ss:$2 sm:$0xff] %v2264_v1 }
 0x180   : > { %v2724_v14 = vpop.permute.xlu0 %1433  ;;  %v2726_v15 = vpop.permute.xlu1 %1395 }
 0x181   : > { %v1399_v17 = vsel %vm580_vm7, %v2709_v13, %v2726_v15  ;;  %v944_v21 = vpop.permute.xlu2 %943 }
 0x182   : > { %v1416_v3 = vmul.f32 %v1412_v46, %v1399_v17  ;;  %v946_v60 = vsel %vm2996_vm11, %v2572_v8, %v944_v21  ;;  %vm768_vm11 = vcmask 64512  }
 0x183   : > { %v954_v10 = vmul.f32 %v950_v42, %v946_v60 }
 0x184   : > { %1420 = vst [vmem:[#allocation2 + $0x88] sm:$0xf] %v1416_v3 }
 0x185   : > { %958 = vst [vmem:[#allocation2 + $0xc8] sm:$0xf] %v954_v10  ;;  %v874_v10 = vperm.slane %v2721_v6, 4 }
 0x186   : > { %v1221_v11 = vld.sshfl [vmem:[#allocation1] sm:$0xff pattern:$0x75316420] }
 0x187   : > { %1222 = vrot.lane.b32.xlu2 %v1221_v11, %s2112_s30  ;;  %1238 = vst [vmem:[#allocation1] ss:$2 sm:$0xff] %v2264_v1  ;;  %s1853_s30 = sshll.u32 %s2173_s19, 5 }
 0x188   : > { %v808_v61 = vpop.permute.xlu0 %807 }
 0x189   : > { %v812_v53 = vsel %vm809_vm15, %v2487_v30, %v808_v61  ;;  %v2738_v48 = vpop.permute.xlu1 %1435  ;;  %v779_v30 = vperm.slane %v1940_v54, 2  ;;  %v1504_v54 = vperm.slane %v274_v4, 2 }
 0x18a   : > { %v825_v49 = vmul.f32 %v821_v33, %v812_v53  ;;  %v1439_v8 = vsel %vm621_vm9, %v2724_v14, %v2738_v48 }
 0x18b   : > { %v1456_v51 = vmul.f32 %v1452_v34, %v1439_v8 }
 0x18c   : > { %v833_v56 = vrot.slane %v825_v49, 4  ;;  %v2768_v49 = vld [vmem:[#allocation8 + $0x58] sm:$0xff] }
 0x18d   : > { %v1464_v58 = vrot.slane %v1456_v51, 4  ;;  %v1044_v51 = vperm.slane %v2768_v49, 0 }
 0x18e   : > { %841 = vst [vmem:[#allocation2 + $0x28] sm:$0xf0] %v833_v56  ;;  %v1242_v63 = vld.sshfl [vmem:[#allocation1 + $0x8] sm:$0xff pattern:$0x75316420]  ;;  %v989_v56 = vperm.slane %v2482_v26, 7 }
 0x18f   : > { %1247 = vrot.lane.b32.xlu1 %v1242_v63, %s2113_s5  ;;  %v1241_v18 = vld.sshfl [vmem:[#allocation1] sm:$0xff pattern:$0x75316420]  ;;  %1472 = vst [vmem:[#allocation2 + $0x88] sm:$0xf0] %v1464_v58  ;;  %v988_v58 = vperm.slane %v2498_v41, 7 }
 0x190   : > { %1245 = vrot.lane.b32.xlu0 %v1241_v18, %s2113_s5  ;;  %1260 = vst [vmem:[#allocation1] ss:$2 sm:$0xff] %v2264_v1  ;;  %v2746_v5 = vpop.permute.xlu0 %856 }
 0x191   : > { %v864_v46 = vsel %vm862_vm10, %v2746_v5, %v2553_v62  ;;  %v2751_v42 = vpop.permute.xlu1 %762 }
 0x192   : > { %v877_v17 = vmul.f32 %v873_v59, %v864_v46  ;;  %v770_v21 = vsel %vm768_vm11, %v2751_v42, %v2687_v24 }
 0x193   : > { %v783_v3 = vmul.f32 %v779_v30, %v770_v21 }
 0x194   : > { %881 = vst [vmem:[#allocation2 + $0x190] sm:$0xf] %v877_v17 }
 0x195   : > { %787 = vst [vmem:[#allocation2 + $0x1b8] sm:$0xf] %v783_v3 }
 0x196   : > { %v1565_v3 = vld [vmem:[#allocation2 + $0x88] sm:$0xff] }
 0x197   : > { %v1261_v60 = vld.sshfl [vmem:[#allocation1] sm:$0xff pattern:$0x75316420]  ;;  %v2757_v11 = vpop.permute.xlu2 %1019 }
 0x198   : > { %1262 = vrot.lane.b32.xlu0 %v1261_v60, %s2113_s5  ;;  %1290 = vst [vmem:[#allocation1] ss:$2 sm:$0xff] %v2264_v1  ;;  %v2761_v33 = vpop.permute.xlu0 %1487 }
 0x199   : > { %v1491_v34 = vsel %vm674_vm8, %v2702_v36, %v2761_v33  ;;  %v861_v61 = vpop.permute.xlu1 %860 }
 0x19a   : > { %v1508_v53 = vmul.f32 %v1504_v54, %v1491_v34  ;;  %v865_v4 = vsel %vm862_vm10, %v2553_v62, %v861_v61 }
 0x19b   : > { %v878_v8 = vmul.f32 %v874_v10, %v865_v4  ;;  %v1561_v10 = vld [vmem:[#allocation2 + $0xa0] sm:$0xff]  ;;  %v991_v4 = vperm.slane %v2721_v6, 7 }
 0x19c   : > { %1512 = vst [vmem:[#allocation2 + $0x30] sm:$0xf] %v1508_v53 }
 0x19d   : > { %882 = vst [vmem:[#allocation2 + $0xb8] sm:$0xf] %v878_v8 }
 0x19f   : > { %v1294_v59 = vld.sshfl [vmem:[#allocation1 + $0x8] sm:$0xff pattern:$0x75316420]  ;;  %v1293_v63 = vld.sshfl [vmem:[#allocation1] sm:$0xff pattern:$0x75316420]  ;;  %v1038_v18 = vpop.permute.xlu2 %1037 }
 0x1a0   : > { %1299 = vrot.lane.b32.xlu0 %v1294_v59, %s2114_s6  ;;  %1297 = vrot.lane.b32.xlu2 %v1293_v63, %s2114_s6  ;;  %1312 = vst [vmem:[#allocation1] ss:$2 sm:$0xff] %v2264_v1  ;;  %v1040_v62 = vsel %vm1027_vm13, %v2625_v29, %v1038_v18  ;;  %v967_v46 = vpop.permute.xlu0 %966  ;;  %v1557_v29 = vld [vmem:[#allocation2 + $0x160] sm:$0xff]  ;;  %v2789_v59 = vld [vmem:[#allocation8 + $0x40] sm:$0xff] }
 0x1a1   : > { %v969_v30 = vpop.permute.xlu1 %968  ;;  %v1048_v17 = vmul.f32 %v1044_v51, %v1040_v62  ;;  %v1549_v63 = vld [vmem:[#allocation2 + $0x148] sm:$0xff]  ;;  %v1041_v62 = vperm.slane %v2789_v59, 0 }
 0x1a2   : > { %v976_v26 = vsel %vm974_vm12, %v969_v30, %v2597_v27  ;;  %v975_v41 = vsel %vm974_vm12, %v967_v46, %v969_v30  ;;  %v1553_v27 = vld [vmem:[#allocation2 + $0xd0] sm:$0xff]  ;;  %v1085_v46 = vperm.slane %v2768_v49, 1 }
 0x1a3   : > { %v1569_v21 = vld [vmem:[#allocation2 + $0x30] sm:$0xf]  ;;  %v993_v54 = vmul.f32 %v989_v56, %v976_v26  ;;  %v992_v60 = vmul.f32 %v988_v58, %v975_v41  ;;  %1052 = vst [vmem:[#allocation2 + $0x8] sm:$0xf] %v1048_v17 }
 0x1a4   : > { %1843 = vmatpush.msk.msra.mxu2 %vm893_vm0, %v1569_v21  ;;  %v2787_v56 = vld [vmem:[#allocation8 + $0x48] sm:$0xff] }
 0x1a5   : > { %v1001_v34 = vrot.slane %v993_v54, 4  ;;  %v1000_v61 = vrot.slane %v992_v60, 4  ;;  %v1042_v30 = vperm.slane %v2787_v56, 0 }
 0x1a6   : > { %1630 = vmatpush.msra.mxu2 %v1565_v3 }
 0x1a7   : > { %v1313_v53 = vld.sshfl [vmem:[#allocation1] sm:$0xff pattern:$0x75316420]  ;;  %1009 = vst [vmem:[#allocation2 + $0xc0] sm:$0xf0] %v1001_v34 }
 0x1a8   : > { %1314 = vrot.lane.b32.xlu1 %v1313_v53, %s2114_s6  ;;  %1330 = vst [vmem:[#allocation1] ss:$2 sm:$0xff] %v2264_v1  ;;  %1631 = vmatpush.msra.mxu2 %v1561_v10 }
 0x1a9   : > { %1008 = vst [vmem:[#allocation2 + $0x90] sm:$0xf0] %v1000_v61  ;;  %v985_v8 = vpop.permute.xlu1 %984 }
 0x1aa   : > { %1632 = vmatpush.msra.mxu2 %v1557_v29  ;;  %v987_v51 = vsel %vm974_vm12, %v2558_v12, %v985_v8  ;;  %v1545_v12 = vld [vmem:[#allocation2 + $0x178] sm:$0xff]  ;;  %v1541_v29 = vld [vmem:[#allocation2 + $0x190] sm:$0xff] }
 0x1ab   : > { %v995_v58 = vmul.f32 %v991_v4, %v987_v51  ;;  %v1537_v4 = vld [vmem:[#allocation2 + $0x1b8] sm:$0xff]  ;;  %v1083_v51 = vperm.slane %v2787_v56, 1 }
 0x1ac   : > { %1633 = vmatpush.msra.mxu2 %v1553_v27  ;;  %v1529_v27 = vld [vmem:[#allocation2 + $0x108] sm:$0xff]  ;;  %v1525_v8 = vld [vmem:[#allocation2 + $0x118] sm:$0xff] }
 0x1ad   : > { %v1003_v18 = vrot.slane %v995_v58, 4  ;;  %v1517_v58 = vld [vmem:[#allocation2 + $0xd8] sm:$0xff] }
 0x1ae   : > { %1634 = vmatpush.msra.mxu2 %v1549_v63 }
 0x1af   : > { %v1334_v17 = vld.sshfl [vmem:[#allocation1 + $0x8] sm:$0xff pattern:$0x75316420]  ;;  %v1333_v26 = vld.sshfl [vmem:[#allocation1] sm:$0xff pattern:$0x75316420]  ;;  %v1022_v41 = vpop.permute.xlu0 %1021 }
 0x1b0   : > { %1339 = vrot.lane.b32.xlu0 %v1334_v17, %s2115_s7  ;;  %1337 = vrot.lane.b32.xlu2 %v1333_v26, %s2115_s7  ;;  %1352 = vst [vmem:[#allocation1] ss:$2 sm:$0xff] %v2264_v1  ;;  %v1028_v21 = vsel %vm1027_vm13, %v2757_v11, %v1022_v41  ;;  %v1029_v3 = vsel %vm1027_vm13, %v1022_v41, %v2603_v44  ;;  %v1079_v54 = vpop.permute.xlu2 %1078  ;;  %v1533_v11 = vld [vmem:[#allocation2 + $0x138] sm:$0xff] }
 0x1b1   : > { %1635 = vmatpush.msra.mxu2 %v1545_v12  ;;  %1011 = vst [vmem:[#allocation2 + $0xc8] sm:$0xf0] %v1003_v18  ;;  %v1045_v60 = vmul.f32 %v1041_v62, %v1028_v21  ;;  %v1046_v10 = vmul.f32 %v1042_v30, %v1029_v3  ;;  %v1081_v34 = vsel %vm1068_vm14, %v2637_v37, %v1079_v54  ;;  %v1521_v37 = vld [vmem:[#allocation2 + $0x130] sm:$0xff]  ;;  %v1082_v18 = vperm.slane %v2789_v59, 1 }
 0x1b2   : > { %v1089_v61 = vmul.f32 %v1085_v46, %v1081_v34 }
 0x1b3   : > { %1049 = vst [vmem:[#allocation2] sm:$0xf] %v1045_v60  ;;  %1636 = vmatpush.msra.mxu2 %v1541_v29  ;;  %v1175_v60 = vperm.slane %v2787_v56, 3 }
 0x1b4   : > { %1050 = vst [vmem:[#allocation2 + $0x68] sm:$0xf] %v1046_v10  ;;  %v1097_v53 = vrot.slane %v1089_v61, 4 }
 0x1b5   : > { %1637 = vmatpush.msra.mxu2 %v1537_v4  ;;  %v1135_v4 = vperm.slane %v2787_v56, 2 }
 0x1b6   : > { %1105 = vst [vmem:[#allocation2 + $0x8] sm:$0xf0] %v1097_v53  ;;  %v1134_v53 = vperm.slane %v2789_v59, 2 }
 0x1b7   : > { %1638 = vmatpush.msra.mxu2 %v1533_v11  ;;  %v1353_v44 = vld.sshfl [vmem:[#allocation1] sm:$0xff pattern:$0x75316420] }
 0x1b8   : > { %1354 = vrot.lane.b32.xlu2 %v1353_v44, %s2115_s7  ;;  %1382 = vst [vmem:[#allocation1] ss:$2 sm:$0xff] %v2264_v1  ;;  %v1114_v63 = vpop.permute.xlu2 %1113  ;;  %s1704_s7 = scalar_lea.hbm %s2994_s3, %s1853_s30 }
 0x1b9   : > { %1639 = vmatpush.msra.mxu2 %v1529_v27 }
 0x1bb   : > { %1640 = vmatpush.msra.mxu2 %v1525_v8 }
 0x1bd   : > { %1641 = vmatpush.msra.mxu2 %v1521_v37 }
 0x1bf   : > { %1642 = vmatpush.msra.mxu2 %v1517_v58  ;;  %v1386_v62 = vld.sshfl [vmem:[#allocation1 + $0x8] sm:$0xff pattern:$0x75316420]  ;;  %v1063_v30 = vpop.permute.xlu1 %1062  ;;  %v1385_v46 = vld.sshfl [vmem:[#allocation1] sm:$0xff pattern:$0x75316420] }
 0x1c0   : > { %1391 = vrot.lane.b32.xlu2 %v1386_v62, %s2116_s8  ;;  %v1070_v17 = vsel %vm1068_vm14, %v1063_v30, %v2630_v47  ;;  %1404 = vst [vmem:[#allocation1] ss:$2 sm:$0xff] %v2264_v1  ;;  %v1061_v26 = vpop.permute.xlu0 %1060  ;;  %1389 = vrot.lane.b32.xlu1 %v1385_v46, %s2116_s8  ;;  %v1137_v58 = vperm.slane %v2768_v49, 2 }
 0x1c1   : > { %v1087_v41 = vmul.f32 %v1083_v51, %v1070_v17  ;;  %v1069_v12 = vsel %vm1068_vm14, %v1061_v26, %v1063_v30 }
 0x1c2   : > { %v1086_v21 = vmul.f32 %v1082_v18, %v1069_v12 }
 0x1c3   : > { %v1095_v3 = vrot.slane %v1087_v41, 4 }
 0x1c4   : > { %v1094_v54 = vrot.slane %v1086_v21, 4 }
 0x1c5   : > { %1103 = vst [vmem:[#allocation2 + $0x68] sm:$0xf0] %v1095_v3 }
 0x1c6   : > { %1102 = vst [vmem:[#allocation2] sm:$0xf0] %v1094_v54 }
 0x1c7   : > { %v1405_v10 = vld.sshfl [vmem:[#allocation1] sm:$0xff pattern:$0x75316420] }
 0x1c8   : > { %1406 = vrot.lane.b32.xlu0 %v1405_v10, %s2116_s8  ;;  %1422 = vst [vmem:[#allocation1] ss:$2 sm:$0xff] %v2264_v1  ;;  %v1156_v47 = vpop.permute.xlu2 %1155  ;;  %s1706_s8 = sshll.u32 %s247_s21, 4  ;;  %s1707_s8 = int_to_ptr.vmem [resolvable:$true] %s1706_s8 }
 0x1c9   : > { %v1162_v34 = vsel %vm339_vm3, %v1156_v47, %v2617_v55 }
 0x1ca   : > { %v1179_v61 = vmul.f32 %v1175_v60, %v1162_v34 }
 0x1cc   : > { %v1187_v29 = vrot.slane %v1179_v61, 4  ;;  %v1227_v61 = vperm.slane %v2787_v56, 4 }
 0x1ce   : > { %1195 = vst [vmem:[#allocation2 + $0xa8] sm:$0xf0] %v1187_v29  ;;  %v1226_v29 = vperm.slane %v2789_v59, 4 }
 0x1cf   : > { %v1426_v11 = vld.sshfl [vmem:[#allocation1 + $0x8] sm:$0xff pattern:$0x75316420]  ;;  %v1425_v44 = vld.sshfl [vmem:[#allocation1] sm:$0xff pattern:$0x75316420] }
 0x1d0   : > { %1431 = vrot.lane.b32.xlu2 %v1426_v11, %s2117_s9  ;;  %v1116_v27 = vpop.permute.xlu0 %1115  ;;  %1429 = vrot.lane.b32.xlu1 %v1425_v44, %s2117_s9  ;;  %1444 = vst [vmem:[#allocation1] ss:$2 sm:$0xff] %v2264_v1  ;;  %v1267_v44 = vperm.slane %v2787_v56, 5 }
 0x1d1   : > { %v1121_v8 = vsel %vm298_vm1, %v1114_v63, %v1116_v27  ;;  %v1122_v55 = vsel %vm298_vm1, %v1116_v27, %v2592_v32  ;;  %v1174_v63 = vperm.slane %v2789_v59, 3  ;;  %v1229_v32 = vperm.slane %v2768_v49, 4 }
 0x1d2   : > { %v1138_v37 = vmul.f32 %v1134_v53, %v1121_v8  ;;  %v1139_v51 = vmul.f32 %v1135_v4, %v1122_v55  ;;  %v1266_v27 = vperm.slane %v2789_v59, 5 }
 0x1d4   : > { %1142 = vst [vmem:[#allocation2 + $0x40] sm:$0xf] %v1138_v37 }
 0x1d5   : > { %1143 = vst [vmem:[#allocation2 + $0xa8] sm:$0xf] %v1139_v51 }
 0x1d7   : > { %v1445_v18 = vld.sshfl [vmem:[#allocation1] sm:$0xff pattern:$0x75316420] }
 0x1d8   : > { %1446 = vrot.lane.b32.xlu2 %v1445_v18, %s2117_s9  ;;  %1474 = vst [vmem:[#allocation1] ss:$2 sm:$0xff] %v2264_v1  ;;  %v1131_v62 = vpop.permute.xlu0 %1130  ;;  %s1708_s9 = sshll.u32 %s1704_s7, 4  ;;  %s1709_s9 = int_to_ptr.hbm [resolvable:$true] %s1708_s9 }
 0x1d9   : > { %v1133_v30 = vsel %vm298_vm1, %v2652_v20, %v1131_v62  ;;  %vm3002_vm1 = vcmask 1039360  }
 0x1da   : > { %v1141_v46 = vmul.f32 %v1137_v58, %v1133_v30 }
 0x1dc   : > { %1145 = vst [vmem:[#allocation2 + $0x1a0] sm:$0xf] %v1141_v46 }
 0x1df   : > { %v1478_v17 = vld.sshfl [vmem:[#allocation1 + $0x8] sm:$0xff pattern:$0x75316420]  ;;  %v1477_v26 = vld.sshfl [vmem:[#allocation1] sm:$0xff pattern:$0x75316420] }
 0x1e0   : > { %791 = vrot.lane.b32.xlu2 %v2477_v19, %s2120_s23  ;;  %1483 = vrot.lane.b32.xlu1 %v1478_v17, %s2118_s11  ;;  %1496 = vst [vmem:[#allocation1] ss:$2 sm:$0xff] %v2264_v1  ;;  %v1154_v41 = vpop.permute.xlu1 %1153  ;;  %v1177_v19 = vperm.slane %v2768_v49, 3  ;;  %v1361_v17 = vperm.slane %v2768_v49, 7 }
 0x1e1   : > { %1481 = vrot.lane.b32.xlu0 %v1477_v26, %s2118_s11  ;;  %v1161_v20 = vsel %vm339_vm3, %v1154_v41, %v1156_v47  ;;  %v1223_v12 = vpop.permute.xlu2 %1222 }
 0x1e2   : > { %v1178_v21 = vmul.f32 %v1174_v63, %v1161_v20  ;;  %v1225_v3 = vsel %vm392_vm2, %v2642_v28, %v1223_v12 }
 0x1e3   : > { %v1233_v54 = vmul.f32 %v1229_v32, %v1225_v3  ;;  %v1319_v32 = vperm.slane %v2787_v56, 6 }
 0x1e4   : > { %v1186_v60 = vrot.slane %v1178_v21, 4 }
 0x1e5   : > { %1237 = vst [vmem:[#allocation2 + $0x20] sm:$0xf] %v1233_v54 }
 0x1e6   : > { %1194 = vst [vmem:[#allocation2 + $0x40] sm:$0xf0] %v1186_v60  ;;  %v2878_v60 = vld [vmem:[#allocation8 + $0x68] sm:$0x7] }
 0x1e7   : > { %v1497_v10 = vld.sshfl [vmem:[#allocation1] sm:$0xff pattern:$0x75316420] }
 0x1e8   : > { %854 = vrot.lane.b32.xlu2 %v2536_v23, %s2121_s24  ;;  %766 = vrot.lane.b32.xlu1 %v2320_v39, %s2126_s12  ;;  %v1171_v1 = vpop.permute.xlu1 %1170 }
 0x1e9   : > { %1498 = vrot.lane.b32.xlu0 %v1497_v10, %s2118_s11  ;;  %v1173_v47 = vsel %vm339_vm3, %v2668_v2, %v1171_v1  ;;  %v1321_v10 = vperm.slane %v2768_v49, 6  ;;  %v1411_v1 = vperm.slane %v2878_v60, 0  ;;  %vm1571_vm3 = vcmask 883712   ;;  %s1689_s11 = scalar_lea.sflag [#allocation5], %s2248_s20 }
 0x1ea   : > { %v1181_v28 = vmul.f32 %v1177_v19, %v1173_v47 }
 0x1ec   : > { %v1189_v34 = vrot.slane %v1181_v28, 4 }
 0x1ee   : > { %1197 = vst [vmem:[#allocation2 + $0x1a0] sm:$0xf0] %v1189_v34 }
 0x1f0   : > { %v1208_v53 = vpop.permute.xlu1 %1207  ;;  %v1206_v4 = vpop.permute.xlu0 %1205  ;;  %844 = vrot.lane.b32.xlu1 %v2519_v7, %s2121_s24 }
 0x1f1   : > { %927 = vrot.lane.b32.xlu0 %v2561_v35, %s2122_s25  ;;  %v1214_v39 = vsel %vm392_vm2, %v1208_v53, %v2663_v45  ;;  %v1213_v23 = vsel %vm392_vm2, %v1206_v4, %v1208_v53  ;;  %v1359_v53 = vperm.slane %v2787_v56, 7  ;;  %v275_v56 = vld [vmem:[#allocation8 + $0x78] sm:$0x7]  ;;  %vm3003_vm2 = vmmov %vm3002_vm1 }
 0x1f2   : > { %v1231_v2 = vmul.f32 %v1227_v61, %v1214_v39  ;;  %v1230_v11 = vmul.f32 %v1226_v29, %v1213_v23  ;;  %v1358_v29 = vperm.slane %v2789_v59, 7 }
 0x1f4   : > { %1235 = vst [vmem:[#allocation2 + $0x100] sm:$0xf] %v1231_v2 }
 0x1f5   : > { %1234 = vst [vmem:[#allocation2 + $0x10] sm:$0xf] %v1230_v11 }
 0x1f9   : > { %801 = vrot.lane.b32.xlu0 %v2496_v40, %s2120_s23  ;;  %v1269_v40 = vperm.slane %v2768_v49, 5  ;;  %s2048_s23 = sshra.s32 %s1709_s9, 4  ;;  %s2049_s23 = int_to_ptr.hbm [resolvable:$true] %s2048_s23 }
 0x1fa   : > { %v1298_v7 = vpop.permute.xlu2 %1297  ;;  %s2050_s24 = scalar_lea.hbm %s2049_s23, 32  ;;  %p2055_p9 = scmp.lt.s32.totalorder %s2049_s23, %s2994_s3 }
 0x1fb   : > { %p2051_p1 = scmp.ne.s32.totalorder %s2049_s23, %s2050_s24  ;;  %p2056_p10 = scmp.lt.s32.totalorder %s2054_s28, %s2050_s24 }
 0x1fd   : > { %p2052_p4 = pnand %p2051_p1, %p2221_p5  ;;  %p2057_p2 = por %p2056_p10, %p2055_p9 }
 0x1ff   : > { %p2053_p8 = pneg %p2052_p4 }
 0x201   : > { %760 = vrot.lane.b32.xlu0 %v2459_v31, %s2126_s12  ;;  %v1248_v35 = vpop.permute.xlu1 %1247  ;;  %p2058_p11 = pnand %p2057_p2, %p2053_p8 }
 0x202   : > { %v1254_v45 = vsel %vm433_vm4, %v1248_v35, %v2679_v16  ;;  %v1246_v8 = vpop.permute.xlu0 %1245  ;;  %v1318_v16 = vperm.slane %v2789_v59, 6 }
 0x203   : > { %v1271_v55 = vmul.f32 %v1267_v44, %v1254_v45  ;;  %v1253_v37 = vsel %vm433_vm4, %v1246_v8, %v1248_v35  ;;  %v272_v35 = vld [vmem:[#allocation8 + $0x60] sm:$0x7]  ;;  %v1453_v45 = vperm.slane %v275_v56, 1 }
 0x204   : > { %v1270_v51 = vmul.f32 %v1266_v27, %v1253_v37  ;;  %v1410_v8 = vperm.slane %v272_v35, 0 }
 0x205   : > { %v1279_v58 = vrot.slane %v1271_v55, 4 }
 0x206   : > { %v1278_v18 = vrot.slane %v1270_v51, 4 }
 0x207   : > { %1287 = vst [vmem:[#allocation2 + $0x100] sm:$0xf0] %v1279_v58 }
 0x208   : > { %1286 = vst [vmem:[#allocation2 + $0x10] sm:$0xf0] %v1278_v18 }
 0x20a   : > { %v1263_v62 = vpop.permute.xlu0 %1262  ;;  %v1338_v30 = vpop.permute.xlu2 %1337 }
 0x20b   : > { %v1265_v31 = vsel %vm433_vm4, %v2657_v0, %v1263_v62 }
 0x20c   : > { %v1273_v46 = vmul.f32 %v1269_v40, %v1265_v31 }
 0x20e   : > { %v1281_v63 = vrot.slane %v1273_v46, 4 }
 0x210   : > { %1289 = vst [vmem:[#allocation2 + $0x20] sm:$0xf0] %v1281_v63  ;;  %v2901_v63 = vld [vmem:[#allocation8 + $0x28] sm:$0xff] }
 0x212   : > { %v1300_v26 = vpop.permute.xlu0 %1299  ;;  %v1355_v41 = vpop.permute.xlu2 %1354 }
 0x213   : > { %v1305_v20 = vsel %vm486_vm5, %v1298_v7, %v1300_v26  ;;  %v1306_v12 = vsel %vm486_vm5, %v1300_v26, %v2689_v25  ;;  %v1357_v21 = vsel %vm527_vm6, %v2674_v22, %v1355_v41 }
 0x214   : > { %v1322_v0 = vmul.f32 %v1318_v16, %v1305_v20  ;;  %v1323_v3 = vmul.f32 %v1319_v32, %v1306_v12  ;;  %v1365_v54 = vmul.f32 %v1361_v17, %v1357_v21  ;;  %v1450_v16 = vperm.slane %v272_v35, 1 }
 0x216   : > { %1326 = vst [vmem:[#allocation2 + $0x70] sm:$0xf] %v1322_v0  ;;  %v1373_v19 = vrot.slane %v1365_v54, 4  ;;  %v1502_v0 = vperm.slane %v272_v35, 2 }
 0x217   : > { %1327 = vst [vmem:[#allocation2 + $0x78] sm:$0xf] %v1323_v3 }
 0x218   : > { %1381 = vst [vmem:[#allocation2 + $0x158] sm:$0xf0] %v1373_v19 }
 0x21a   : > { %v1315_v47 = vpop.permute.xlu1 %1314  ;;  %v1392_v28 = vpop.permute.xlu2 %1391 }
 0x21b   : > { %v1317_v25 = vsel %vm486_vm5, %v2691_v9, %v1315_v47  ;;  %v1398_v22 = vsel %vm580_vm7, %v1392_v28, %v2709_v13  ;;  %v1451_v13 = vperm.slane %v2878_v60, 1 }
 0x21c   : > { %v1325_v34 = vmul.f32 %v1321_v10, %v1317_v25  ;;  %v1415_v61 = vmul.f32 %v1411_v1, %v1398_v22 }
 0x21e   : > { %1329 = vst [vmem:[#allocation2 + $0x158] sm:$0xf] %v1325_v34 }
 0x21f   : > { %1419 = vst [vmem:[#allocation2 + $0x38] sm:$0xf] %v1415_v61 }
 0x222   : > { %v1340_v4 = vpop.permute.xlu0 %1339 }
 0x223   : > { %v1345_v49 = vsel %vm527_vm6, %v1338_v30, %v1340_v4  ;;  %v1346_v39 = vsel %vm527_vm6, %v1340_v4, %v2700_v38 }
 0x224   : > { %v1362_v23 = vmul.f32 %v1358_v29, %v1345_v49  ;;  %v1363_v2 = vmul.f32 %v1359_v53, %v1346_v39  ;;  %v2918_v49 = vld [vmem:[#allocation8 + $0x20] sm:$0xff] }
 0x226   : > { %v1370_v9 = vrot.slane %v1362_v23, 4  ;;  %v1371_v11 = vrot.slane %v1363_v2, 4  ;;  %v948_v23 = vperm.slane %v2901_v63, 6 }
 0x228   : > { %1378 = vst [vmem:[#allocation2 + $0x70] sm:$0xf0] %v1370_v9 }
 0x229   : > { %1379 = vst [vmem:[#allocation2 + $0x78] sm:$0xf0] %v1371_v11 }
 0x22a   : > { %v1432_v44 = vpop.permute.xlu2 %1431 }
 0x22b   : > { %v1438_v59 = vsel %vm621_vm9, %v1432_v44, %v2724_v14  ;;  %v1413_v14 = vperm.slane %v275_v56, 0 }
 0x22c   : > { %v1455_v27 = vmul.f32 %v1451_v13, %v1438_v59  ;;  %v1556_v13 = vld [vmem:[#allocation2 + $0x100] sm:$0xff] }
 0x22e   : > { %v1463_v7 = vrot.slane %v1455_v27, 4 }
 0x22f   : > { %v1559_v2 = vld [vmem:[#allocation2 + $0x70] sm:$0xff] }
 0x230   : > { %1471 = vst [vmem:[#allocation2 + $0x38] sm:$0xf0] %v1463_v7  ;;  %v1560_v39 = vld [vmem:[#allocation2 + $0x78] sm:$0xff] }
 0x232   : > { %v1447_v38 = vpop.permute.xlu2 %1446  ;;  %v1390_v55 = vpop.permute.xlu1 %1389 }
 0x233   : > { %v1449_v37 = vsel %vm621_vm9, %v2738_v48, %v1447_v38  ;;  %v1397_v51 = vsel %vm580_vm7, %v1390_v55, %v1392_v28  ;;  %v872_v48 = vperm.slane %v2901_v63, 4  ;;  %v1505_v28 = vperm.slane %v275_v56, 2  ;;  %v1555_v56 = vld [vmem:[#allocation2 + $0x10] sm:$0xff]  ;;  %v1552_v38 = vld [vmem:[#allocation2 + $0xa8] sm:$0xff] }
 0x234   : > { %v1457_v58 = vmul.f32 %v1453_v45, %v1449_v37  ;;  %v1414_v18 = vmul.f32 %v1410_v8, %v1397_v51  ;;  %v1551_v8 = vld [vmem:[#allocation2 + $0x40] sm:$0xff] }
 0x235   : > { %v2928_v37 = vld [vmem:[#allocation6] sm:$0xff] }
 0x236   : > { %v1465_v40 = vrot.slane %v1457_v58, 4  ;;  %1418 = vst [vmem:[#allocation2 + $0x128] sm:$0xf] %v1414_v18  ;;  %1844 = vmatmul.msk.f32.vlgmr.msra.gmra.mxu2 %vm1571_vm3, %v2928_v37  ;;  %v818_v58 = vperm.slane %v2918_v49, 3  ;;  %v819_v18 = vperm.slane %v2901_v63, 3 }
 0x238   : > { %1473 = vst [vmem:[#allocation2 + $0x170] sm:$0xf0] %v1465_v40  ;;  %v1562_v40 = vld [vmem:[#allocation2 + $0x158] sm:$0xff] }
 0x23a   : > { %v1407_v62 = vpop.permute.xlu0 %1406  ;;  %v2897_v30 = vpop.permute.xlu2 %791 }
 0x23b   : > { %v1409_v31 = vsel %vm580_vm7, %v2726_v15, %v1407_v62  ;;  %v1503_v15 = vperm.slane %v2878_v60, 2 }
 0x23c   : > { %v1417_v46 = vmul.f32 %v1413_v14, %v1409_v31 }
 0x23e   : > { %1421 = vst [vmem:[#allocation2 + $0x170] sm:$0xf] %v1417_v46  ;;  %v1558_v46 = vld [vmem:[#allocation2 + $0x20] sm:$0xff] }
 0x242   : > { %v855_v32 = vpop.permute.xlu2 %854  ;;  %v1430_v17 = vpop.permute.xlu1 %1429 }
 0x243   : > { %v863_v26 = vsel %vm862_vm10, %v855_v32, %v2746_v5  ;;  %v1437_v41 = vsel %vm621_vm9, %v1430_v17, %v1432_v44  ;;  %v780_v5 = vperm.slane %v2721_v6, 2  ;;  %v1564_v6 = vld [vmem:[#allocation2 + $0x38] sm:$0xff]  ;;  %v1554_v17 = vld [vmem:[#allocation2 + $0x1a0] sm:$0xff] }
 0x244   : > { %v876_v20 = vmul.f32 %v872_v48, %v863_v26  ;;  %v1454_v12 = vmul.f32 %v1450_v16, %v1437_v41 }
 0x245   : > { %v1566_v51 = vld [vmem:[#allocation2 + $0x170] sm:$0xff] }
 0x246   : > { %880 = vst [vmem:[#allocation2 + $0xf8] sm:$0xf] %v876_v20  ;;  %v1462_v21 = vrot.slane %v1454_v12, 4 }
 0x248   : > { %1470 = vst [vmem:[#allocation2 + $0x128] sm:$0xf0] %v1462_v21  ;;  %v1550_v21 = vld [vmem:[#allocation2 + $0x8] sm:$0xff] }
 0x24f   : > { %v1563_v4 = vld [vmem:[#allocation2 + $0x128] sm:$0xff] }
 0x252   : > { %v1484_v3 = vpop.permute.xlu1 %1483 }
 0x253   : > { %v1490_v54 = vsel %vm674_vm8, %v1484_v3, %v2702_v36  ;;  %v1482_v19 = vpop.permute.xlu0 %1481 }
 0x254   : > { %v1507_v10 = vmul.f32 %v1503_v15, %v1490_v54  ;;  %v1489_v1 = vsel %vm674_vm8, %v1482_v19, %v1484_v3  ;;  %v1540_v15 = vld [vmem:[#allocation2 + $0xf8] sm:$0xff] }
 0x255   : > { %v1506_v47 = vmul.f32 %v1502_v0, %v1489_v1  ;;  %v1546_v0 = vld [vmem:[#allocation2 + $0xc8] sm:$0xff] }
 0x256   : > { %1511 = vst [vmem:[#allocation2 + $0xf0] sm:$0xf] %v1507_v10  ;;  %v1542_v10 = vld [vmem:[#allocation2 + $0xb8] sm:$0xff] }
 0x257   : > { %1510 = vst [vmem:[#allocation2 + $0x58] sm:$0xf] %v1506_v47 }
 0x25a   : > { %v767_v25 = vpop.permute.xlu1 %766 }
 0x25b   : > { %v771_v22 = vsel %vm768_vm11, %v2687_v24, %v767_v25  ;;  %v1499_v60 = vpop.permute.xlu0 %1498  ;;  %v871_v24 = vperm.slane %v2918_v49, 4  ;;  %v1526_v25 = vld [vmem:[#allocation2 + $0x98] sm:$0xff] }
 0x25c   : > { %v784_v34 = vmul.f32 %v780_v5, %v771_v22  ;;  %v1501_v61 = vsel %vm674_vm8, %v2761_v33, %v1499_v60  ;;  %v947_v33 = vperm.slane %v2918_v49, 6  ;;  %v1522_v60 = vld [vmem:[#allocation2 + $0x48] sm:$0xff] }
 0x25d   : > { %v1509_v36 = vmul.f32 %v1505_v28, %v1501_v61  ;;  %v1568_v29 = vld [vmem:[#allocation2 + $0xf0] sm:$0xf]  ;;  %v1530_v28 = vld [vmem:[#allocation2 + $0x60] sm:$0xff]  ;;  %v1532_v61 = vld [vmem:[#allocation2 + $0x188] sm:$0xff] }
 0x25e   : > { %788 = vst [vmem:[#allocation2 + $0x28] sm:$0xf] %v784_v34  ;;  %v1567_v53 = vld [vmem:[#allocation2 + $0x58] sm:$0xf]  ;;  %1841 = vmatpush.msk.msra.mxu1 %vm893_vm0, %v1568_v29  ;;  %v1528_v29 = vld [vmem:[#allocation2 + $0x150] sm:$0xff] }
 0x25f   : > { %1513 = vst [vmem:[#allocation2 + $0x198] sm:$0xf] %v1509_v36  ;;  %1839 = vmatpush.msk.msra.mxu0 %vm893_vm0, %v1567_v53  ;;  %v1518_v34 = vld [vmem:[#allocation2 + $0x18] sm:$0xff]  ;;  %v1527_v36 = vld [vmem:[#allocation2 + $0x120] sm:$0xff] }
 0x260   : > { %1610 = vmatpush.msra.mxu1 %v1564_v6  ;;  %v1523_v53 = vld [vmem:[#allocation2 + $0x180] sm:$0xff]  ;;  %v1524_v6 = vld [vmem:[#allocation2 + $0x110] sm:$0xff] }
 0x261   : > { %1590 = vmatpush.msra.mxu0 %v1563_v4  ;;  %v1519_v4 = vld [vmem:[#allocation2 + $0x50] sm:$0xff] }
 0x262   : > { %1611 = vmatpush.msra.mxu1 %v1560_v39  ;;  %v845_v9 = vpop.permute.xlu1 %844  ;;  %v1516_v39 = vld [vmem:[#allocation2 + $0x1b0] sm:$0xff] }
 0x263   : > { %1591 = vmatpush.msra.mxu0 %v1559_v2  ;;  %v928_v11 = vpop.permute.xlu0 %927  ;;  %v870_v44 = vsel %vm862_vm10, %v845_v9, %v855_v32 }
 0x264   : > { %v934_v59 = vsel %vm3002_vm1, %v2716_v50, %v928_v11  ;;  %v935_v27 = vsel %vm3003_vm2, %v928_v11, %v2546_v43  ;;  %1612 = vmatpush.msra.mxu1 %v1556_v13  ;;  %v875_v7 = vmul.f32 %v871_v24, %v870_v44  ;;  %v1548_v50 = vld [vmem:[#allocation2 + $0x68] sm:$0xff]  ;;  %v1547_v43 = vld [vmem:[#allocation2] sm:$0xff]  ;;  %v1515_v24 = vld [vmem:[#allocation2 + $0xb0] sm:$0xff] }
 0x265   : > { %v951_v35 = vmul.f32 %v947_v33, %v934_v59  ;;  %v952_v45 = vmul.f32 %v948_v23, %v935_v27  ;;  %1592 = vmatpush.msra.mxu0 %v1555_v56  ;;  %v1538_v5 = vld [vmem:[#allocation2 + $0x28] sm:$0xff] }
 0x266   : > { %1613 = vmatpush.msra.mxu1 %v1552_v38  ;;  %v1570_v55 = vld [vmem:[#allocation2 + $0x198] sm:$0xf]  ;;  %879 = vst [vmem:[#allocation2 + $0xe8] sm:$0xf] %v875_v7 }
 0x267   : > { %955 = vst [vmem:[#allocation2 + $0x90] sm:$0xf] %v951_v35  ;;  %1593 = vmatpush.msra.mxu0 %v1551_v8  ;;  %1845 = vmatpush.msk.msra.mxu3 %vm893_vm0, %v1570_v55 }
 0x268   : > { %956 = vst [vmem:[#allocation2 + $0xc0] sm:$0xf] %v952_v45  ;;  %1614 = vmatpush.msra.mxu1 %v1548_v50 }
 0x269   : > { %1594 = vmatpush.msra.mxu0 %v1547_v43  ;;  %1650 = vmatpush.msra.mxu3 %v1566_v51 }
 0x26b   : > { %1651 = vmatpush.msra.mxu3 %v1562_v40  ;;  %v802_v14 = vpop.permute.xlu0 %801 }
 0x26c   : > { %v810_v62 = vsel %vm809_vm15, %v802_v14, %v2711_v57  ;;  %v817_v31 = vsel %vm809_vm15, %v2897_v30, %v802_v14  ;;  %v777_v57 = vperm.slane %v2918_v49, 2  ;;  %v778_v30 = vperm.slane %v2901_v63, 2  ;;  %v1534_v63 = vld [vmem:[#allocation2 + $0x140] sm:$0xff]  ;;  %v1520_v49 = vld [vmem:[#allocation2 + $0x168] sm:$0xff] }
 0x26d   : > { %v822_v48 = vmul.f32 %v818_v58, %v817_v31  ;;  %v823_v16 = vmul.f32 %v819_v18, %v810_v62  ;;  %1652 = vmatpush.msra.mxu3 %v1558_v46  ;;  %v1539_v26 = vld [vmem:[#allocation2 + $0xe8] sm:$0xff] }
 0x26e   : > { %v1543_v32 = vld [vmem:[#allocation2 + $0x90] sm:$0xff] }
 0x26f   : > { %v830_v41 = vrot.slane %v822_v48, 4  ;;  %v831_v20 = vrot.slane %v823_v16, 4  ;;  %1595 = vmatpush.msra.mxu0 %v1543_v32  ;;  %v1544_v12 = vld [vmem:[#allocation2 + $0xc0] sm:$0xff]  ;;  %1653 = vmatpush.msra.mxu3 %v1554_v17 }
 0x270   : > { %1615 = vmatpush.msra.mxu1 %v1544_v12 }
 0x271   : > { %838 = vst [vmem:[#allocation2 + $0x80] sm:$0xf0] %v830_v41  ;;  %1654 = vmatpush.msra.mxu3 %v1550_v21  ;;  %1596 = vmatpush.msra.mxu0 %v1539_v26 }
 0x272   : > { %839 = vst [vmem:[#allocation2 + $0x1a8] sm:$0xf0] %v831_v20  ;;  %1616 = vmatpush.msra.mxu1 %v1540_v15 }
 0x273   : > { %1655 = vmatpush.msra.mxu3 %v1546_v0  ;;  %v761_v3 = vpop.permute.xlu0 %760 }
 0x274   : > { %v769_v54 = vsel %vm768_vm11, %v761_v3, %v2751_v42  ;;  %v776_v19 = vsel %vm768_vm11, %v2632_v52, %v761_v3  ;;  %v1531_v52 = vld [vmem:[#allocation2 + $0xe0] sm:$0xff] }
 0x275   : > { %v781_v1 = vmul.f32 %v777_v57, %v776_v19  ;;  %v782_v47 = vmul.f32 %v778_v30, %v769_v54  ;;  %1656 = vmatpush.msra.mxu3 %v1542_v10 }
 0x277   : > { %785 = vst [vmem:[#allocation2 + $0x80] sm:$0xf] %v781_v1  ;;  %1657 = vmatpush.msra.mxu3 %v1538_v5 }
 0x278   : > { %786 = vst [vmem:[#allocation2 + $0x1a8] sm:$0xf] %v782_v47 }
 0x279   : > { %1658 = vmatpush.msra.mxu3 %v1534_v63 }
 0x27b   : > { %1659 = vmatpush.msra.mxu3 %v1530_v28 }
 0x27d   : > { %1660 = vmatpush.msra.mxu3 %v1526_v25 }
 0x27e   : > { %v1535_v22 = vld [vmem:[#allocation2 + $0x80] sm:$0xff] }
 0x27f   : > { %1597 = vmatpush.msra.mxu0 %v1535_v22  ;;  %v1536_v42 = vld [vmem:[#allocation2 + $0x1a8] sm:$0xff]  ;;  %1661 = vmatpush.msra.mxu3 %v1522_v60 }
 0x280   : > { %1617 = vmatpush.msra.mxu1 %v1536_v42 }
 0x281   : > { %1598 = vmatpush.msra.mxu0 %v1531_v52  ;;  %1662 = vmatpush.msra.mxu3 %v1518_v34 }
 0x282   : > { %1618 = vmatpush.msra.mxu1 %v1532_v61  ;;  %1846 = vmatmul.msk.f32.vlgmr.msra.gmra.mxu3 %vm1571_vm3, %v2928_v37 }
 0x283   : > { %1599 = vmatpush.msra.mxu0 %v1527_v36 }
 0x284   : > { %1619 = vmatpush.msra.mxu1 %v1528_v29 }
 0x285   : > { %1600 = vmatpush.msra.mxu0 %v1523_v53 }
 0x286   : > { %1620 = vmatpush.msra.mxu1 %v1524_v6 }
 0x287   : > { %1601 = vmatpush.msra.mxu0 %v1519_v4 }
 0x288   : > { %1621 = vmatpush.msra.mxu1 %v1520_v49 }
 0x289   : > { %1602 = vmatpush.msra.mxu0 %v1515_v24 }
 0x28a   : > { %1622 = vmatpush.msra.mxu1 %v1516_v39  ;;  %1840 = vmatmul.msk.f32.vlgmr.msra.gmra.mxu0 %vm1571_vm3, %v2928_v37 }
 0x28b   : > { %1842 = vmatmul.msk.f32.vlgmr.msra.gmra.mxu1 %vm1571_vm3, %v2928_v37 }
 0x2b9   : > { %v1644_v33 = vpop.f32.mrf.mxu2 }
 0x2ba   : > { %1669 = vst [vmem:[%s247_s21 + $0x10] sm:$0xff] %v1644_v33  ;;  %v1679_v59 = vmul.f32 %v1644_v33, %v1644_v33 }
 0x305   : > { %v1664_v23 = vpop.f32.mrf.mxu3 }
 0x306   : > { %1670 = vst [vmem:[%s247_s21 + $0x18] sm:$0xff] %v1664_v23 }
 0x307   : > { %v1604_v2 = vpop.f32.mrf.mxu0 }
 0x308   : > { %1667 = vst [vmem:[%s247_s21] sm:$0xff] %v1604_v2  ;;  %v1677_v9 = vmul.f32 %v1604_v2, %v1604_v2  ;;  %v1624_v11 = vpop.f32.mrf.mxu1 }
 0x309   : > { %1668 = vst [vmem:[%s247_s21 + $0x8] sm:$0xff] %v1624_v11  ;;  %v1671_v13 = vadd.f32 %v1624_v11, %v1604_v2  ;;  %v1678_v44 = vmul.f32 %v1624_v11, %v1624_v11 }
 0x30a   : > { %2061 = shalt.err (!%p2058_p11)
}
 0x30b   : > { %1864 = dma.vmem_to_hbm [thread:$0]  (%p2221_p5), %s1707_s8, 512, %s1709_s9, %s1689_s11   ;;  %v1681_v27 = vadd.f32 %v1678_v44, %v1677_v9  ;;  %v1672_v56 = vadd.f32 %v1671_v13, %v1644_v33  ;;  %v1680_v7 = vmul.f32 %v1664_v23, %v1664_v23  ;;  %vm1686_vm0 = vcmask 15368  }
 0x30c   : > { %p254_p12 = scmp.lt.s32.totalorder %s2173_s19, 1 }
 0x30d   : > { %v1673_v35 = vadd.f32 %v1672_v56, %v1664_v23  ;;  %v1682_v45 = vadd.f32 %v1681_v27, %v1679_v59 }
 0x30e   : > { %s3010_s19 = smov (!%p254_p12, %s2173_s19), 1 }
 0x30f   : > { %1674 = vadd.xlane.f32.xlu1 %v1673_v35  ;;  %v1683_v8 = vadd.f32 %v1682_v45, %v1680_v7  ;;  %s1838_s20 = sshll.u32 %s3010_s19, 3 }
 0x310   : > { %s257_s30 = scalar_lea.vmem %s2995_s4, %s1838_s20 }
 0x311   : > { %1684 = vadd.xlane.f32.xlu2 %v1683_v8 }
 0x382   : > { %v1675_v38 = vpop.xlane.xlu1 %1674 }
 0x383   : > { %1676 = vst.msk [vmem:[%s257_s30] sm:$0xff] %vm862_vm10, %v1675_v38 }
 0x384   : > { %v1685_v55 = vpop.xlane.xlu2 %1684 }
 0x385   : > { %1687 = vst.msk [vmem:[%s257_s30] sm:$0xff] %vm1686_vm0, %v1685_v55 }
 0x386 PF: > { %s1723_s14 = sand.u32 1, %s2092_s15   ;;  %p3004_p5 = scmp.ge.s32.totalorder %s2104_s18, 2 }
 0x387   : > { %s1724_s19 = scalar_lea.sflag [#allocation5], %s1723_s14 }
 0x388   : > { %p1878_p13 = pnand %p3004_p5, %p2187_p6 }
 0x38a   : > { %p1879_p0 = pneg %p1878_p13 }
 0x38c   : > { %2087 = dma.done.wait (%p1879_p0), %s1724_s19, 512  }
 0x38d   : > { %2089 = vsyncadd (%p1879_p0), %s1724_s19, 4294966784  ;;  %p19_p3 = scmp.ge.s32.totalorder %s2208_s10, 4   ;;  %s3005_s15 = smov %s2096_s16 }
 0x38e   : > { %s3006_s16 = smov %s2100_s17  ;;  %s3007_s17 = smov %s2217_s13 }
 0x38f   : > { %s3008_s18 = smov %s2208_s10  ;;  %21 = sbr.rel (!%p19_p3) target bundleno = 6 (0x6), region = 125 }
 0x394   :  { %1737 = vsyncpa [#allocation4], 1 }
 0x395   :  { %1739 = vsyncpa [#allocation4 + $0x1], 1 }
 0x396   :  { %1740 = vsyncpa [#allocation7], 1 }
 0x397   :  { %1741 = vsyncpa [#allocation5], 1 }
 0x398   :  { %1743 = vsyncpa [#allocation5 + $0x1], 1 }

</bundles_post_ra>
